<compile_context>
chip_gen: v5e
topology: v5e:2x2
jax: 0.10.0
libtpu: 0.0.40
codegen_flags: <defaults>
</compile_context>

<pallas_src>
import functools

import jax
import jax.numpy as jnp
from jax.experimental import pallas as pl
from jax.experimental.pallas import tpu as pltpu

NEG_SLOPE = 0.01  # F.leaky_relu default


def _leaky(x):
    return jnp.where(x > 0, x, NEG_SLOPE * x)


def _pick_tile(total, target):
    """Largest multiple-of-8 divisor of `total` that is <= target (else total)."""
    if total <= target:
        return total
    for t in range(target, 7, -1):
        if total % t == 0 and t % 8 == 0:
            return t
    return total


# ---------------------------------------------------------------------------
# Generic row-tiled linear (+ optional leaky ReLU):  (R, Cin) @ (Cin, Cout)
# ---------------------------------------------------------------------------
def _linear_kernel(x_ref, w_ref, b_ref, o_ref, *, activate):
    y = (jnp.dot(x_ref[...], w_ref[...], preferred_element_type=jnp.float32)
         + b_ref[...])
    if activate:
        y = _leaky(y)
    o_ref[...] = y.astype(o_ref.dtype)


def linear_rows(x2d, w_t, b, *, activate, row_tile=256):
    R, Cin = x2d.shape
    Cout = w_t.shape[1]
    b2 = b.reshape(1, -1)
    TM = _pick_tile(R, row_tile)
    grid = (R // TM,)
    return pl.pallas_call(
        functools.partial(_linear_kernel, activate=activate),
        out_shape=jax.ShapeDtypeStruct((R, Cout), jnp.float32),
        grid_spec=pltpu.PrefetchScalarGridSpec(
            num_scalar_prefetch=0,
            grid=grid,
            in_specs=[
                pl.BlockSpec((TM, Cin), lambda i: (i, 0)),
                pl.BlockSpec(w_t.shape, lambda i: (0, 0)),
                pl.BlockSpec(b2.shape, lambda i: (0, 0)),
            ],
            out_specs=pl.BlockSpec((TM, Cout), lambda i: (i, 0)),
        ),
        compiler_params=pltpu.CompilerParams(
            dimension_semantics=("parallel",)),
    )(x2d, w_t, b2)


# ---------------------------------------------------------------------------
# Global stem: z_global -> leaky(global_0) -> leaky(global_1).  Tiny; one block.
# ---------------------------------------------------------------------------
def _global_stem_kernel(zg_ref, w0_ref, b0_ref, w1_ref, b1_ref, o_ref):
    h = _leaky(jnp.dot(zg_ref[...], w0_ref[...],
                       preferred_element_type=jnp.float32) + b0_ref[...])
    o_ref[...] = _leaky(jnp.dot(h, w1_ref[...],
                                preferred_element_type=jnp.float32)
                        + b1_ref[...])


def global_stem(zg, w0_t, b0, w1_t, b1):
    B, L = zg.shape
    return pl.pallas_call(
        _global_stem_kernel,
        out_shape=jax.ShapeDtypeStruct((B, L), jnp.float32),
    )(zg, w0_t, b0.reshape(1, -1), w1_t, b1.reshape(1, -1))


# ---------------------------------------------------------------------------
# EPiC_layer kernel (batch-tiled, generator residual fused)
# ---------------------------------------------------------------------------
def _epic_layer_kernel(
    xg_ref, xl_ref, zg_ref, zl_ref,
    wpool_ref, wg1g_ref, bg1_ref,
    wg2_ref, bg2_ref,
    wl1x_ref, wl1g_ref, bl1_ref,
    wl2_ref, bl2_ref,
    xg_out_ref, xl_out_ref,
    *, mxu_dtype,
):
    xl = xl_ref[...]                       # (TB, N, H) f32
    xg = xg_ref[...]                       # (TB, L)    f32
    TB, N, H = xl.shape

    # ---- global branch: pooled-sum (mean folded into W_pool) + global MLP --
    x_sum = jnp.sum(xl, axis=1)            # (TB, H)
    g1 = (jnp.dot(x_sum.astype(mxu_dtype), wpool_ref[...],
                  preferred_element_type=jnp.float32)
          + jnp.dot(xg.astype(mxu_dtype), wg1g_ref[...],
                    preferred_element_type=jnp.float32)
          + bg1_ref[...])                  # (TB, H)
    g1 = _leaky(g1)
    g = _leaky(jnp.dot(g1.astype(mxu_dtype), wg2_ref[...],
                       preferred_element_type=jnp.float32)
               + bg2_ref[...] + xg)        # (TB, L)
    # generator residual (z_global_in) fused here
    xg_out_ref[...] = (g + zg_ref[...]).astype(xg_out_ref.dtype)

    # ---- local branch: concat(local, global) split into two matmuls --------
    g_proj = (jnp.dot(g.astype(mxu_dtype), wl1g_ref[...],
                      preferred_element_type=jnp.float32)
              + bl1_ref[...])              # (TB, H), broadcast over points
    xl2d = xl.reshape(TB * N, H)
    l1 = (jnp.dot(xl2d.astype(mxu_dtype), wl1x_ref[...],
                  preferred_element_type=jnp.float32).reshape(TB, N, H)
          + g_proj[:, None, :])
    l1 = _leaky(l1)
    l2 = (jnp.dot(l1.reshape(TB * N, H).astype(mxu_dtype), wl2_ref[...],
                  preferred_element_type=jnp.float32).reshape(TB, N, H)
          + bl2_ref[...] + xl)
    l2 = _leaky(l2)
    # generator residual (z_local_in) fused here
    xl_out_ref[...] = (l2 + zl_ref[...]).astype(xl_out_ref.dtype)


def epic_layer_pallas(x_global, x_local, zg_in, zl_in, kparams, *,
                      batch_tile=8, mxu_dtype=jnp.float32):
    B, N, H = x_local.shape
    L = x_global.shape[1]
    TB = _pick_tile(B, batch_tile)
    grid = (B // TB,)

    full = lambda a: pl.BlockSpec(a.shape, lambda b: (0,) * a.ndim)
    xg_spec = pl.BlockSpec((TB, L), lambda b: (b, 0))
    xl_spec = pl.BlockSpec((TB, N, H), lambda b: (b, 0, 0))

    grid_spec = pltpu.PrefetchScalarGridSpec(
        num_scalar_prefetch=0,
        grid=grid,
        in_specs=[xg_spec, xl_spec, xg_spec, xl_spec]
                 + [full(a) for a in kparams],
        out_specs=[
            pl.BlockSpec((TB, L), lambda b: (b, 0)),
            pl.BlockSpec((TB, N, H), lambda b: (b, 0, 0)),
        ],
    )
    out_shapes = (
        jax.ShapeDtypeStruct((B, L), jnp.float32),
        jax.ShapeDtypeStruct((B, N, H), jnp.float32),
    )
    return pl.pallas_call(
        functools.partial(_epic_layer_kernel, mxu_dtype=mxu_dtype),
        out_shape=out_shapes,
        grid_spec=grid_spec,
        compiler_params=pltpu.CompilerParams(
            dimension_semantics=("parallel",)),
    )(x_global, x_local, zg_in, zl_in, *kparams)


# ---------------------------------------------------------------------------
# Parameter construction (weight_norm applied at setup time) and prep
# ---------------------------------------------------------------------------
def make_weight_norm_linear(key, in_dim, out_dim):
    """weight_norm(nn.Linear): returns effective (W, b) with W of shape (out, in)."""
    kv, kg, kb = jax.random.split(key, 3)
    v = jax.random.normal(kv, (out_dim, in_dim), jnp.float32) * 0.1
    g = jax.random.uniform(kg, (out_dim,), jnp.float32, minval=0.5, maxval=1.5)
    b = jax.random.normal(kb, (out_dim,), jnp.float32) * 0.1
    w = g[:, None] * v / jnp.linalg.norm(v, axis=1, keepdims=True)
    return w, b


def build_generator_params(key, latent, latent_local, hid_d, feats, equiv_layers):
    keys = jax.random.split(key, 4 + equiv_layers)
    p = {
        "local_0": make_weight_norm_linear(keys[0], latent_local, hid_d),
        "global_0": make_weight_norm_linear(keys[1], latent, hid_d),
        "global_1": make_weight_norm_linear(keys[2], hid_d, latent),
        "local_1": make_weight_norm_linear(keys[3], hid_d, feats),
        "layers": [],
    }
    for i in range(equiv_layers):
        lk = jax.random.split(keys[4 + i], 4)
        p["layers"].append({
            "fc_global1": make_weight_norm_linear(lk[0], 2 * hid_d + latent, hid_d),
            "fc_global2": make_weight_norm_linear(lk[1], hid_d, latent),
            "fc_local1": make_weight_norm_linear(lk[2], hid_d + latent, hid_d),
            "fc_local2": make_weight_norm_linear(lk[3], hid_d, hid_d),
        })
    return p


def prepare_layer_kernel_params(lp, n_points, mxu_dtype):
    """Transpose to (in, out), split the concat inputs, fold mean into sum."""
    wg1, bg1 = lp["fc_global1"]          # (H, 2H+L)
    wg2, bg2 = lp["fc_global2"]          # (L, H)
    wl1, bl1 = lp["fc_local1"]           # (H, H+L)
    wl2, bl2 = lp["fc_local2"]           # (H, H)
    L, H = wg2.shape

    wg1_t = wg1.T                        # (2H+L, H)
    w_pool = wg1_t[:H] / n_points + wg1_t[H:2 * H]   # mean/N folded into sum
    wg1g = wg1_t[2 * H:]                 # (L, H)
    wl1_t = wl1.T                        # (H+L, H)
    wl1x = wl1_t[:H]
    wl1g = wl1_t[H:]

    c = lambda w: w.astype(mxu_dtype)
    return (c(w_pool), c(wg1g), bg1.reshape(1, -1),
            c(wg2.T), bg2.reshape(1, -1),
            c(wl1x), c(wl1g), bl1.reshape(1, -1),
            c(wl2.T), bl2.reshape(1, -1))


# ---------------------------------------------------------------------------
# Full EPiC_generator forward (Pallas)
# ---------------------------------------------------------------------------
def epic_generator_pallas(z_global, z_local, params, *,
                          return_latent_space=True, batch_tile=8,
                          mxu_dtype=jnp.float32):
    B, N, _ = z_local.shape
    latent = z_global.shape[1]
    w_l0, b_l0 = params["local_0"]
    w_g0, b_g0 = params["global_0"]
    w_g1, b_g1 = params["global_1"]
    w_l1, b_l1 = params["local_1"]
    hid = w_l0.shape[0]
    feats = w_l1.shape[0]

    latent_rows = [z_global]

    x_local = linear_rows(z_local.reshape(B * N, -1), w_l0.T, b_l0,
                          activate=True).reshape(B, N, hid)
    x_global = global_stem(z_global, w_g0.T, b_g0, w_g1.T, b_g1)
    latent_rows.append(x_global)

    zg_in, zl_in = x_global, x_local
    for lp in params["layers"]:
        kparams = prepare_layer_kernel_params(lp, N, mxu_dtype)
        x_global, x_local = epic_layer_pallas(
            x_global, x_local, zg_in, zl_in, kparams,
            batch_tile=batch_tile, mxu_dtype=mxu_dtype)
        latent_rows.append(x_global)

    out = linear_rows(x_local.reshape(B * N, hid), w_l1.T, b_l1,
                      activate=False).reshape(B, N, feats)
    latent_tensor = jnp.stack(latent_rows, axis=1)   # (B, 2+equiv_layers, latent)

    if return_latent_space:
        return out, latent_tensor
    return out


# ---------------------------------------------------------------------------
# Pure-JAX reference replica of the PyTorch forward (for verification)
# ---------------------------------------------------------------------------
def _epic_layer_reference(x_global, x_local, lp):
    wg1, bg1 = lp["fc_global1"]
    wg2, bg2 = lp["fc_global2"]
    wl1, bl1 = lp["fc_local1"]
    wl2, bl2 = lp["fc_local2"]
    B, N, _ = x_local.shape
    L = x_global.shape[1]
    x_mean = x_local.mean(axis=1)
    x_sum = x_local.sum(axis=1)
    cat_g = jnp.concatenate([x_mean, x_sum, x_global], axis=1)
    g1 = _leaky(cat_g @ wg1.T + bg1)
    g = _leaky(g1 @ wg2.T + bg2 + x_global)
    g2l = jnp.broadcast_to(g[:, None, :], (B, N, L))
    cat_l = jnp.concatenate([x_local, g2l], axis=2)
    l1 = _leaky(cat_l @ wl1.T + bl1)
    l = _leaky(l1 @ wl2.T + bl2 + x_local)
    return g, l


def epic_generator_reference(z_global, z_local, params, return_latent_space=True):
    B, N, _ = z_local.shape
    w_l0, b_l0 = params["local_0"]
    w_g0, b_g0 = params["global_0"]
    w_g1, b_g1 = params["global_1"]
    w_l1, b_l1 = params["local_1"]
    latent_tensor = z_global.reshape(B, 1, -1)
    z_local = _leaky(z_local @ w_l0.T + b_l0)
    z_global = _leaky(z_global @ w_g0.T + b_g0)
    z_global = _leaky(z_global @ w_g1.T + b_g1)
    latent_tensor = jnp.concatenate(
        [latent_tensor, z_global.reshape(B, 1, -1)], axis=1)
    z_global_in, z_local_in = z_global, z_local
    for lp in params["layers"]:
        z_global, z_local = _epic_layer_reference(z_global, z_local, lp)
        z_global = z_global + z_global_in
        z_local = z_local + z_local_in
        latent_tensor = jnp.concatenate(
            [latent_tensor, z_global.reshape(B, 1, -1)], axis=1)
    out = z_local @ w_l1.T + b_l1
    if return_latent_space:
        return out, latent_tensor
    return out


if __name__ == "__main__":
    # Small demo shapes (real configs: make hid_d/latent multiples of 128 for
    # lane-dense stores; re-derive batch_tile for v7x's 64 MiB VMEM).
    B, N = 16, 32            # batch, points per event
    latent = 16              # global latent dim
    latent_local = 8         # per-point noise dim
    hid_d = 32
    feats = 4
    equiv_layers = 2

    key = jax.random.PRNGKey(0)
    k_zg, k_zl, k_p = jax.random.split(key, 3)
    z_global = jax.random.normal(k_zg, (B, latent), jnp.float32)
    z_local = jax.random.normal(k_zl, (B, N, latent_local), jnp.float32)

    params = build_generator_params(k_p, latent, latent_local, hid_d, feats,
                                    equiv_layers)

    fwd = jax.jit(lambda zg, zl: epic_generator_pallas(
        zg, zl, params, return_latent_space=True, batch_tile=8))
    out, lat = fwd(z_global, z_local)
    jax.block_until_ready((out, lat))

    out_ref, lat_ref = epic_generator_reference(z_global, z_local, params,
                                                return_latent_space=True)
    assert jnp.allclose(out, out_ref, atol=1e-4, rtol=1e-4), \
        float(jnp.max(jnp.abs(out - out_ref)))
    assert jnp.allclose(lat, lat_ref, atol=1e-4, rtol=1e-4), \
        float(jnp.max(jnp.abs(lat - lat_ref)))

    print("KERNEL_OK")
</pallas_src>

<mosaic_0001>
module attributes {stable_mosaic.version = 11 : i64} {
  func.func @_epic_layer_kernel(%arg0: i32, %arg1: memref<8x16xf32, #tpu.memory_space<vmem>>, %arg2: memref<8x32x32xf32, #tpu.memory_space<vmem>>, %arg3: memref<8x16xf32, #tpu.memory_space<vmem>>, %arg4: memref<8x32x32xf32, #tpu.memory_space<vmem>>, %arg5: memref<32x32xf32, #tpu.memory_space<vmem>>, %arg6: memref<16x32xf32, #tpu.memory_space<vmem>>, %arg7: memref<1x32xf32, #tpu.memory_space<vmem>>, %arg8: memref<32x16xf32, #tpu.memory_space<vmem>>, %arg9: memref<1x16xf32, #tpu.memory_space<vmem>>, %arg10: memref<32x32xf32, #tpu.memory_space<vmem>>, %arg11: memref<16x32xf32, #tpu.memory_space<vmem>>, %arg12: memref<1x32xf32, #tpu.memory_space<vmem>>, %arg13: memref<32x32xf32, #tpu.memory_space<vmem>>, %arg14: memref<1x32xf32, #tpu.memory_space<vmem>>, %arg15: memref<8x16xf32, #tpu.memory_space<vmem>>, %arg16: memref<8x32x32xf32, #tpu.memory_space<vmem>>) attributes {dimension_semantics = [#tpu.dimension_semantics<parallel>], iteration_bounds = array<i64: 2>, scalar_prefetch = 0 : i64, scratch_operands = 0 : i64, tpu.core_type = #tpu.core_type<tc>, window_params = [{transform_indices = @transform_0, window_bounds = array<i64: 8, 16>}, {transform_indices = @transform_1, window_bounds = array<i64: 8, 32, 32>}, {transform_indices = @transform_2, window_bounds = array<i64: 8, 16>}, {transform_indices = @transform_3, window_bounds = array<i64: 8, 32, 32>}, {pipeline_mode = #tpu.pipeline_mode<synchronous>, transform_indices = @transform_4, window_bounds = array<i64: 32, 32>}, {pipeline_mode = #tpu.pipeline_mode<synchronous>, transform_indices = @transform_5, window_bounds = array<i64: 16, 32>}, {pipeline_mode = #tpu.pipeline_mode<synchronous>, transform_indices = @transform_6, window_bounds = array<i64: 1, 32>}, {pipeline_mode = #tpu.pipeline_mode<synchronous>, transform_indices = @transform_7, window_bounds = array<i64: 32, 16>}, {pipeline_mode = #tpu.pipeline_mode<synchronous>, transform_indices = @transform_8, window_bounds = array<i64: 1, 16>}, {pipeline_mode = #tpu.pipeline_mode<synchronous>, transform_indices = @transform_9, window_bounds = array<i64: 32, 32>}, {pipeline_mode = #tpu.pipeline_mode<synchronous>, transform_indices = @transform_10, window_bounds = array<i64: 16, 32>}, {pipeline_mode = #tpu.pipeline_mode<synchronous>, transform_indices = @transform_11, window_bounds = array<i64: 1, 32>}, {pipeline_mode = #tpu.pipeline_mode<synchronous>, transform_indices = @transform_12, window_bounds = array<i64: 32, 32>}, {pipeline_mode = #tpu.pipeline_mode<synchronous>, transform_indices = @transform_13, window_bounds = array<i64: 1, 32>}, {transform_indices = @transform_14, window_bounds = array<i64: 8, 16>}, {transform_indices = @transform_15, window_bounds = array<i64: 8, 32, 32>}]} {
    %c0 = arith.constant 0 : index
    %c0_0 = arith.constant 0 : index
    %c0_1 = arith.constant 0 : index
    %0 = vector.load %arg2[%c0, %c0_0, %c0_1] : memref<8x32x32xf32, #tpu.memory_space<vmem>>, vector<8x32x32xf32>
    %c0_2 = arith.constant 0 : index
    %c0_3 = arith.constant 0 : index
    %1 = vector.load %arg1[%c0_2, %c0_3] : memref<8x16xf32, #tpu.memory_space<vmem>>, vector<8x16xf32>
    %cst = arith.constant dense<0.000000e+00> : vector<8x32xf32>
    %2 = vector.multi_reduction <add>, %0, %cst [1] : vector<8x32x32xf32> to vector<8x32xf32>
    %c0_4 = arith.constant 0 : index
    %c0_5 = arith.constant 0 : index
    %3 = vector.load %arg5[%c0_4, %c0_5] : memref<32x32xf32, #tpu.memory_space<vmem>>, vector<32x32xf32>
    %cst_6 = arith.constant dense<0.000000e+00> : vector<8x32xf32>
    %4 = tpu.matmul %2, %3, %cst_6 {dimension_numbers = #tpu.dot_dimension_numbers<[1], [0], [0], [1], [0, 0, 1, 1], [], []>} : vector<8x32xf32>, vector<32x32xf32>, vector<8x32xf32> -> vector<8x32xf32>
    %c0_7 = arith.constant 0 : index
    %c0_8 = arith.constant 0 : index
    %5 = vector.load %arg6[%c0_7, %c0_8] : memref<16x32xf32, #tpu.memory_space<vmem>>, vector<16x32xf32>
    %cst_9 = arith.constant dense<0.000000e+00> : vector<8x32xf32>
    %6 = tpu.matmul %1, %5, %cst_9 {dimension_numbers = #tpu.dot_dimension_numbers<[1], [0], [0], [1], [0, 0, 1, 1], [], []>} : vector<8x16xf32>, vector<16x32xf32>, vector<8x32xf32> -> vector<8x32xf32>
    %7 = arith.addf %4, %6 : vector<8x32xf32>
    %c0_10 = arith.constant 0 : index
    %c0_11 = arith.constant 0 : index
    %8 = vector.load %arg7[%c0_10, %c0_11] : memref<1x32xf32, #tpu.memory_space<vmem>>, vector<1x32xf32>
    %9 = vector.broadcast %8 : vector<1x32xf32> to vector<8x32xf32>
    %10 = arith.addf %7, %9 : vector<8x32xf32>
    %cst_12 = arith.constant 0.000000e+00 : f32
    %11 = vector.broadcast %cst_12 : f32 to vector<8x32xf32>
    %12 = arith.cmpf ogt, %10, %11 : vector<8x32xf32>
    %cst_13 = arith.constant 0.00999999977 : f32
    %13 = vector.broadcast %cst_13 : f32 to vector<8x32xf32>
    %14 = arith.mulf %13, %10 : vector<8x32xf32>
    %15 = arith.select %12, %10, %14 : vector<8x32xi1>, vector<8x32xf32>
    %c0_14 = arith.constant 0 : index
    %c0_15 = arith.constant 0 : index
    %16 = vector.load %arg8[%c0_14, %c0_15] : memref<32x16xf32, #tpu.memory_space<vmem>>, vector<32x16xf32>
    %cst_16 = arith.constant dense<0.000000e+00> : vector<8x16xf32>
    %17 = tpu.matmul %15, %16, %cst_16 {dimension_numbers = #tpu.dot_dimension_numbers<[1], [0], [0], [1], [0, 0, 1, 1], [], []>} : vector<8x32xf32>, vector<32x16xf32>, vector<8x16xf32> -> vector<8x16xf32>
    %c0_17 = arith.constant 0 : index
    %c0_18 = arith.constant 0 : index
    %18 = vector.load %arg9[%c0_17, %c0_18] : memref<1x16xf32, #tpu.memory_space<vmem>>, vector<1x16xf32>
    %19 = vector.broadcast %18 : vector<1x16xf32> to vector<8x16xf32>
    %20 = arith.addf %17, %19 : vector<8x16xf32>
    %21 = arith.addf %20, %1 : vector<8x16xf32>
    %cst_19 = arith.constant 0.000000e+00 : f32
    %22 = vector.broadcast %cst_19 : f32 to vector<8x16xf32>
    %23 = arith.cmpf ogt, %21, %22 : vector<8x16xf32>
    %cst_20 = arith.constant 0.00999999977 : f32
    %24 = vector.broadcast %cst_20 : f32 to vector<8x16xf32>
    %25 = arith.mulf %24, %21 : vector<8x16xf32>
    %26 = arith.select %23, %21, %25 : vector<8x16xi1>, vector<8x16xf32>
    %c0_21 = arith.constant 0 : index
    %c0_22 = arith.constant 0 : index
    %27 = vector.load %arg3[%c0_21, %c0_22] : memref<8x16xf32, #tpu.memory_space<vmem>>, vector<8x16xf32>
    %28 = arith.addf %26, %27 : vector<8x16xf32>
    %c0_23 = arith.constant 0 : index
    %c0_24 = arith.constant 0 : index
    %29 = vector.load %arg15[%c0_23, %c0_24] : memref<8x16xf32, #tpu.memory_space<vmem>>, vector<8x16xf32>
    tpu.vector_store %arg15[%c0_23, %c0_24], %28 {strides = array<i32>} : memref<8x16xf32, #tpu.memory_space<vmem>>, vector<8x16xf32>,
    %c0_25 = arith.constant 0 : index
    %c0_26 = arith.constant 0 : index
    %30 = vector.load %arg11[%c0_25, %c0_26] : memref<16x32xf32, #tpu.memory_space<vmem>>, vector<16x32xf32>
    %cst_27 = arith.constant dense<0.000000e+00> : vector<8x32xf32>
    %31 = tpu.matmul %26, %30, %cst_27 {dimension_numbers = #tpu.dot_dimension_numbers<[1], [0], [0], [1], [0, 0, 1, 1], [], []>} : vector<8x16xf32>, vector<16x32xf32>, vector<8x32xf32> -> vector<8x32xf32>
    %c0_28 = arith.constant 0 : index
    %c0_29 = arith.constant 0 : index
    %32 = vector.load %arg12[%c0_28, %c0_29] : memref<1x32xf32, #tpu.memory_space<vmem>>, vector<1x32xf32>
    %33 = vector.broadcast %32 : vector<1x32xf32> to vector<8x32xf32>
    %34 = arith.addf %31, %33 : vector<8x32xf32>
    %35 = vector.shape_cast %0 : vector<8x32x32xf32> to vector<256x32xf32>
    %c0_30 = arith.constant 0 : index
    %c0_31 = arith.constant 0 : index
    %36 = vector.load %arg10[%c0_30, %c0_31] : memref<32x32xf32, #tpu.memory_space<vmem>>, vector<32x32xf32>
    %cst_32 = arith.constant dense<0.000000e+00> : vector<256x32xf32>
    %37 = tpu.matmul %35, %36, %cst_32 {dimension_numbers = #tpu.dot_dimension_numbers<[1], [0], [0], [1], [0, 0, 1, 1], [], []>} : vector<256x32xf32>, vector<32x32xf32>, vector<256x32xf32> -> vector<256x32xf32>
    %38 = vector.shape_cast %37 : vector<256x32xf32> to vector<8x32x32xf32>
    %39 = vector.shape_cast %34 : vector<8x32xf32> to vector<8x1x32xf32>
    %40 = vector.broadcast %39 : vector<8x1x32xf32> to vector<8x32x32xf32>
    %41 = arith.addf %38, %40 : vector<8x32x32xf32>
    %cst_33 = arith.constant 0.000000e+00 : f32
    %42 = vector.broadcast %cst_33 : f32 to vector<8x32x32xf32>
    %43 = arith.cmpf ogt, %41, %42 : vector<8x32x32xf32>
    %cst_34 = arith.constant 0.00999999977 : f32
    %44 = vector.broadcast %cst_34 : f32 to vector<8x32x32xf32>
    %45 = arith.mulf %44, %41 : vector<8x32x32xf32>
    %46 = arith.select %43, %41, %45 : vector<8x32x32xi1>, vector<8x32x32xf32>
    %47 = vector.shape_cast %46 : vector<8x32x32xf32> to vector<256x32xf32>
    %c0_35 = arith.constant 0 : index
    %c0_36 = arith.constant 0 : index
    %48 = vector.load %arg13[%c0_35, %c0_36] : memref<32x32xf32, #tpu.memory_space<vmem>>, vector<32x32xf32>
    %cst_37 = arith.constant dense<0.000000e+00> : vector<256x32xf32>
    %49 = tpu.matmul %47, %48, %cst_37 {dimension_numbers = #tpu.dot_dimension_numbers<[1], [0], [0], [1], [0, 0, 1, 1], [], []>} : vector<256x32xf32>, vector<32x32xf32>, vector<256x32xf32> -> vector<256x32xf32>
    %50 = vector.shape_cast %49 : vector<256x32xf32> to vector<8x32x32xf32>
    %c0_38 = arith.constant 0 : index
    %c0_39 = arith.constant 0 : index
    %51 = vector.load %arg14[%c0_38, %c0_39] : memref<1x32xf32, #tpu.memory_space<vmem>>, vector<1x32xf32>
    %52 = vector.shape_cast %51 : vector<1x32xf32> to vector<1x1x32xf32>
    %53 = vector.broadcast %52 : vector<1x1x32xf32> to vector<8x32x32xf32>
    %54 = arith.addf %50, %53 : vector<8x32x32xf32>
    %55 = arith.addf %54, %0 : vector<8x32x32xf32>
    %cst_40 = arith.constant 0.000000e+00 : f32
    %56 = vector.broadcast %cst_40 : f32 to vector<8x32x32xf32>
    %57 = arith.cmpf ogt, %55, %56 : vector<8x32x32xf32>
    %cst_41 = arith.constant 0.00999999977 : f32
    %58 = vector.broadcast %cst_41 : f32 to vector<8x32x32xf32>
    %59 = arith.mulf %58, %55 : vector<8x32x32xf32>
    %60 = arith.select %57, %55, %59 : vector<8x32x32xi1>, vector<8x32x32xf32>
    %c0_42 = arith.constant 0 : index
    %c0_43 = arith.constant 0 : index
    %c0_44 = arith.constant 0 : index
    %61 = vector.load %arg4[%c0_42, %c0_43, %c0_44] : memref<8x32x32xf32, #tpu.memory_space<vmem>>, vector<8x32x32xf32>
    %62 = arith.addf %60, %61 : vector<8x32x32xf32>
    %c0_45 = arith.constant 0 : index
    %c0_46 = arith.constant 0 : index
    %c0_47 = arith.constant 0 : index
    %63 = vector.load %arg16[%c0_45, %c0_46, %c0_47] : memref<8x32x32xf32, #tpu.memory_space<vmem>>, vector<8x32x32xf32>
    tpu.vector_store %arg16[%c0_45, %c0_46, %c0_47], %62 {strides = array<i32>} : memref<8x32x32xf32, #tpu.memory_space<vmem>>, vector<8x32x32xf32>,
    return
  }
  func.func @transform_0(%arg0: i32) -> (i32, i32) {
    %c0_i32 = arith.constant 0 : i32
    %c0_i32_0 = arith.constant 0 : i32
    return %arg0, %c0_i32 : i32, i32
  }
  func.func @transform_1(%arg0: i32) -> (i32, i32, i32) {
    %c0_i32 = arith.constant 0 : i32
    %c0_i32_0 = arith.constant 0 : i32
    %c0_i32_1 = arith.constant 0 : i32
    return %arg0, %c0_i32, %c0_i32_0 : i32, i32, i32
  }
  func.func @transform_2(%arg0: i32) -> (i32, i32) {
    %c0_i32 = arith.constant 0 : i32
    %c0_i32_0 = arith.constant 0 : i32
    return %arg0, %c0_i32 : i32, i32
  }
  func.func @transform_3(%arg0: i32) -> (i32, i32, i32) {
    %c0_i32 = arith.constant 0 : i32
    %c0_i32_0 = arith.constant 0 : i32
    %c0_i32_1 = arith.constant 0 : i32
    return %arg0, %c0_i32, %c0_i32_0 : i32, i32, i32
  }
  func.func @transform_4(%arg0: i32) -> (i32, i32) {
    %c0_i32 = arith.constant 0 : i32
    %c0_i32_0 = arith.constant 0 : i32
    %c0_i32_1 = arith.constant 0 : i32
    return %c0_i32, %c0_i32_0 : i32, i32
  }
  func.func @transform_5(%arg0: i32) -> (i32, i32) {
    %c0_i32 = arith.constant 0 : i32
    %c0_i32_0 = arith.constant 0 : i32
    %c0_i32_1 = arith.constant 0 : i32
    return %c0_i32, %c0_i32_0 : i32, i32
  }
  func.func @transform_6(%arg0: i32) -> (i32, i32) {
    %c0_i32 = arith.constant 0 : i32
    %c0_i32_0 = arith.constant 0 : i32
    %c0_i32_1 = arith.constant 0 : i32
    return %c0_i32, %c0_i32_0 : i32, i32
  }
  func.func @transform_7(%arg0: i32) -> (i32, i32) {
    %c0_i32 = arith.constant 0 : i32
    %c0_i32_0 = arith.constant 0 : i32
    %c0_i32_1 = arith.constant 0 : i32
    return %c0_i32, %c0_i32_0 : i32, i32
  }
  func.func @transform_8(%arg0: i32) -> (i32, i32) {
    %c0_i32 = arith.constant 0 : i32
    %c0_i32_0 = arith.constant 0 : i32
    %c0_i32_1 = arith.constant 0 : i32
    return %c0_i32, %c0_i32_0 : i32, i32
  }
  func.func @transform_9(%arg0: i32) -> (i32, i32) {
    %c0_i32 = arith.constant 0 : i32
    %c0_i32_0 = arith.constant 0 : i32
    %c0_i32_1 = arith.constant 0 : i32
    return %c0_i32, %c0_i32_0 : i32, i32
  }
  func.func @transform_10(%arg0: i32) -> (i32, i32) {
    %c0_i32 = arith.constant 0 : i32
    %c0_i32_0 = arith.constant 0 : i32
    %c0_i32_1 = arith.constant 0 : i32
    return %c0_i32, %c0_i32_0 : i32, i32
  }
  func.func @transform_11(%arg0: i32) -> (i32, i32) {
    %c0_i32 = arith.constant 0 : i32
    %c0_i32_0 = arith.constant 0 : i32
    %c0_i32_1 = arith.constant 0 : i32
    return %c0_i32, %c0_i32_0 : i32, i32
  }
  func.func @transform_12(%arg0: i32) -> (i32, i32) {
    %c0_i32 = arith.constant 0 : i32
    %c0_i32_0 = arith.constant 0 : i32
    %c0_i32_1 = arith.constant 0 : i32
    return %c0_i32, %c0_i32_0 : i32, i32
  }
  func.func @transform_13(%arg0: i32) -> (i32, i32) {
    %c0_i32 = arith.constant 0 : i32
    %c0_i32_0 = arith.constant 0 : i32
    %c0_i32_1 = arith.constant 0 : i32
    return %c0_i32, %c0_i32_0 : i32, i32
  }
  func.func @transform_14(%arg0: i32) -> (i32, i32) {
    %c0_i32 = arith.constant 0 : i32
    %c0_i32_0 = arith.constant 0 : i32
    return %arg0, %c0_i32 : i32, i32
  }
  func.func @transform_15(%arg0: i32) -> (i32, i32, i32) {
    %c0_i32 = arith.constant 0 : i32
    %c0_i32_0 = arith.constant 0 : i32
    %c0_i32_1 = arith.constant 0 : i32
    return %arg0, %c0_i32, %c0_i32_0 : i32, i32, i32
  }
}

module attributes {stable_mosaic.version = 11 : i64} {
  func.func @_linear_kernel(%arg0: i32, %arg1: memref<256x8xf32, #tpu.memory_space<vmem>>, %arg2: memref<8x32xf32, #tpu.memory_space<vmem>>, %arg3: memref<1x32xf32, #tpu.memory_space<vmem>>, %arg4: memref<256x32xf32, #tpu.memory_space<vmem>>) attributes {dimension_semantics = [#tpu.dimension_semantics<parallel>], iteration_bounds = array<i64: 2>, scalar_prefetch = 0 : i64, scratch_operands = 0 : i64, tpu.core_type = #tpu.core_type<tc>, window_params = [{transform_indices = @transform_0, window_bounds = array<i64: 256, 8>}, {pipeline_mode = #tpu.pipeline_mode<synchronous>, transform_indices = @transform_1, window_bounds = array<i64: 8, 32>}, {pipeline_mode = #tpu.pipeline_mode<synchronous>, transform_indices = @transform_2, window_bounds = array<i64: 1, 32>}, {transform_indices = @transform_3, window_bounds = array<i64: 256, 32>}]} {
    %c0 = arith.constant 0 : index
    %c0_0 = arith.constant 0 : index
    %0 = vector.load %arg1[%c0, %c0_0] : memref<256x8xf32, #tpu.memory_space<vmem>>, vector<256x8xf32>
    %c0_1 = arith.constant 0 : index
    %c0_2 = arith.constant 0 : index
    %1 = vector.load %arg2[%c0_1, %c0_2] : memref<8x32xf32, #tpu.memory_space<vmem>>, vector<8x32xf32>
    %cst = arith.constant dense<0.000000e+00> : vector<256x32xf32>
    %2 = tpu.matmul %0, %1, %cst {dimension_numbers = #tpu.dot_dimension_numbers<[1], [0], [0], [1], [0, 0, 1, 1], [], []>} : vector<256x8xf32>, vector<8x32xf32>, vector<256x32xf32> -> vector<256x32xf32>
    %c0_3 = arith.constant 0 : index
    %c0_4 = arith.constant 0 : index
    %3 = vector.load %arg3[%c0_3, %c0_4] : memref<1x32xf32, #tpu.memory_space<vmem>>, vector<1x32xf32>
    %4 = vector.broadcast %3 : vector<1x32xf32> to vector<256x32xf32>
    %5 = arith.addf %2, %4 : vector<256x32xf32>
    %cst_5 = arith.constant 0.000000e+00 : f32
    %6 = vector.broadcast %cst_5 : f32 to vector<256x32xf32>
    %7 = arith.cmpf ogt, %5, %6 : vector<256x32xf32>
    %cst_6 = arith.constant 0.00999999977 : f32
    %8 = vector.broadcast %cst_6 : f32 to vector<256x32xf32>
    %9 = arith.mulf %8, %5 : vector<256x32xf32>
    %10 = arith.select %7, %5, %9 : vector<256x32xi1>, vector<256x32xf32>
    %c0_7 = arith.constant 0 : index
    %c0_8 = arith.constant 0 : index
    %11 = vector.load %arg4[%c0_7, %c0_8] : memref<256x32xf32, #tpu.memory_space<vmem>>, vector<256x32xf32>
    tpu.vector_store %arg4[%c0_7, %c0_8], %10 {strides = array<i32>} : memref<256x32xf32, #tpu.memory_space<vmem>>, vector<256x32xf32>,
    return
  }
  func.func @transform_0(%arg0: i32) -> (i32, i32) {
    %c0_i32 = arith.constant 0 : i32
    %c0_i32_0 = arith.constant 0 : i32
    return %arg0, %c0_i32 : i32, i32
  }
  func.func @transform_1(%arg0: i32) -> (i32, i32) {
    %c0_i32 = arith.constant 0 : i32
    %c0_i32_0 = arith.constant 0 : i32
    %c0_i32_1 = arith.constant 0 : i32
    return %c0_i32, %c0_i32_0 : i32, i32
  }
  func.func @transform_2(%arg0: i32) -> (i32, i32) {
    %c0_i32 = arith.constant 0 : i32
    %c0_i32_0 = arith.constant 0 : i32
    %c0_i32_1 = arith.constant 0 : i32
    return %c0_i32, %c0_i32_0 : i32, i32
  }
  func.func @transform_3(%arg0: i32) -> (i32, i32) {
    %c0_i32 = arith.constant 0 : i32
    %c0_i32_0 = arith.constant 0 : i32
    return %arg0, %c0_i32 : i32, i32
  }
}

module attributes {stable_mosaic.version = 11 : i64} {
  func.func @_global_stem_kernel(%arg0: memref<16x16xf32, #tpu.memory_space<vmem>>, %arg1: memref<16x32xf32, #tpu.memory_space<vmem>>, %arg2: memref<1x32xf32, #tpu.memory_space<vmem>>, %arg3: memref<32x16xf32, #tpu.memory_space<vmem>>, %arg4: memref<1x16xf32, #tpu.memory_space<vmem>>, %arg5: memref<16x16xf32, #tpu.memory_space<vmem>>) attributes {dimension_semantics = [], scalar_prefetch = 0 : i64, scratch_operands = 0 : i64, tpu.core_type = #tpu.core_type<tc>} {
    %c0 = arith.constant 0 : index
    %c0_0 = arith.constant 0 : index
    %0 = vector.load %arg0[%c0, %c0_0] : memref<16x16xf32, #tpu.memory_space<vmem>>, vector<16x16xf32>
    %c0_1 = arith.constant 0 : index
    %c0_2 = arith.constant 0 : index
    %1 = vector.load %arg1[%c0_1, %c0_2] : memref<16x32xf32, #tpu.memory_space<vmem>>, vector<16x32xf32>
    %cst = arith.constant dense<0.000000e+00> : vector<16x32xf32>
    %2 = tpu.matmul %0, %1, %cst {dimension_numbers = #tpu.dot_dimension_numbers<[1], [0], [0], [1], [0, 0, 1, 1], [], []>} : vector<16x16xf32>, vector<16x32xf32>, vector<16x32xf32> -> vector<16x32xf32>
    %c0_3 = arith.constant 0 : index
    %c0_4 = arith.constant 0 : index
    %3 = vector.load %arg2[%c0_3, %c0_4] : memref<1x32xf32, #tpu.memory_space<vmem>>, vector<1x32xf32>
    %4 = vector.broadcast %3 : vector<1x32xf32> to vector<16x32xf32>
    %5 = arith.addf %2, %4 : vector<16x32xf32>
    %cst_5 = arith.constant 0.000000e+00 : f32
    %6 = vector.broadcast %cst_5 : f32 to vector<16x32xf32>
    %7 = arith.cmpf ogt, %5, %6 : vector<16x32xf32>
    %cst_6 = arith.constant 0.00999999977 : f32
    %8 = vector.broadcast %cst_6 : f32 to vector<16x32xf32>
    %9 = arith.mulf %8, %5 : vector<16x32xf32>
    %10 = arith.select %7, %5, %9 : vector<16x32xi1>, vector<16x32xf32>
    %c0_7 = arith.constant 0 : index
    %c0_8 = arith.constant 0 : index
    %11 = vector.load %arg3[%c0_7, %c0_8] : memref<32x16xf32, #tpu.memory_space<vmem>>, vector<32x16xf32>
    %cst_9 = arith.constant dense<0.000000e+00> : vector<16x16xf32>
    %12 = tpu.matmul %10, %11, %cst_9 {dimension_numbers = #tpu.dot_dimension_numbers<[1], [0], [0], [1], [0, 0, 1, 1], [], []>} : vector<16x32xf32>, vector<32x16xf32>, vector<16x16xf32> -> vector<16x16xf32>
    %c0_10 = arith.constant 0 : index
    %c0_11 = arith.constant 0 : index
    %13 = vector.load %arg4[%c0_10, %c0_11] : memref<1x16xf32, #tpu.memory_space<vmem>>, vector<1x16xf32>
    %14 = vector.broadcast %13 : vector<1x16xf32> to vector<16x16xf32>
    %15 = arith.addf %12, %14 : vector<16x16xf32>
    %cst_12 = arith.constant 0.000000e+00 : f32
    %16 = vector.broadcast %cst_12 : f32 to vector<16x16xf32>
    %17 = arith.cmpf ogt, %15, %16 : vector<16x16xf32>
    %cst_13 = arith.constant 0.00999999977 : f32
    %18 = vector.broadcast %cst_13 : f32 to vector<16x16xf32>
    %19 = arith.mulf %18, %15 : vector<16x16xf32>
    %20 = arith.select %17, %15, %19 : vector<16x16xi1>, vector<16x16xf32>
    %c0_14 = arith.constant 0 : index
    %c0_15 = arith.constant 0 : index
    %21 = vector.load %arg5[%c0_14, %c0_15] : memref<16x16xf32, #tpu.memory_space<vmem>>, vector<16x16xf32>
    tpu.vector_store %arg5[%c0_14, %c0_15], %20 {strides = array<i32>} : memref<16x16xf32, #tpu.memory_space<vmem>>, vector<16x16xf32>,
    return
  }
}

module attributes {stable_mosaic.version = 11 : i64} {
  func.func @_linear_kernel(%arg0: i32, %arg1: memref<256x32xf32, #tpu.memory_space<vmem>>, %arg2: memref<32x4xf32, #tpu.memory_space<vmem>>, %arg3: memref<1x4xf32, #tpu.memory_space<vmem>>, %arg4: memref<256x4xf32, #tpu.memory_space<vmem>>) attributes {dimension_semantics = [#tpu.dimension_semantics<parallel>], iteration_bounds = array<i64: 2>, scalar_prefetch = 0 : i64, scratch_operands = 0 : i64, tpu.core_type = #tpu.core_type<tc>, window_params = [{transform_indices = @transform_0, window_bounds = array<i64: 256, 32>}, {pipeline_mode = #tpu.pipeline_mode<synchronous>, transform_indices = @transform_1, window_bounds = array<i64: 32, 4>}, {pipeline_mode = #tpu.pipeline_mode<synchronous>, transform_indices = @transform_2, window_bounds = array<i64: 1, 4>}, {transform_indices = @transform_3, window_bounds = array<i64: 256, 4>}]} {
    %c0 = arith.constant 0 : index
    %c0_0 = arith.constant 0 : index
    %0 = vector.load %arg1[%c0, %c0_0] : memref<256x32xf32, #tpu.memory_space<vmem>>, vector<256x32xf32>
    %c0_1 = arith.constant 0 : index
    %c0_2 = arith.constant 0 : index
    %1 = vector.load %arg2[%c0_1, %c0_2] : memref<32x4xf32, #tpu.memory_space<vmem>>, vector<32x4xf32>
    %cst = arith.constant dense<0.000000e+00> : vector<256x4xf32>
    %2 = tpu.matmul %0, %1, %cst {dimension_numbers = #tpu.dot_dimension_numbers<[1], [0], [0], [1], [0, 0, 1, 1], [], []>} : vector<256x32xf32>, vector<32x4xf32>, vector<256x4xf32> -> vector<256x4xf32>
    %c0_3 = arith.constant 0 : index
    %c0_4 = arith.constant 0 : index
    %3 = vector.load %arg3[%c0_3, %c0_4] : memref<1x4xf32, #tpu.memory_space<vmem>>, vector<1x4xf32>
    %4 = vector.broadcast %3 : vector<1x4xf32> to vector<256x4xf32>
    %5 = arith.addf %2, %4 : vector<256x4xf32>
    %c0_5 = arith.constant 0 : index
    %c0_6 = arith.constant 0 : index
    %6 = vector.load %arg4[%c0_5, %c0_6] : memref<256x4xf32, #tpu.memory_space<vmem>>, vector<256x4xf32>
    tpu.vector_store %arg4[%c0_5, %c0_6], %5 {strides = array<i32>} : memref<256x4xf32, #tpu.memory_space<vmem>>, vector<256x4xf32>,
    return
  }
  func.func @transform_0(%arg0: i32) -> (i32, i32) {
    %c0_i32 = arith.constant 0 : i32
    %c0_i32_0 = arith.constant 0 : i32
    return %arg0, %c0_i32 : i32, i32
  }
  func.func @transform_1(%arg0: i32) -> (i32, i32) {
    %c0_i32 = arith.constant 0 : i32
    %c0_i32_0 = arith.constant 0 : i32
    %c0_i32_1 = arith.constant 0 : i32
    return %c0_i32, %c0_i32_0 : i32, i32
  }
  func.func @transform_2(%arg0: i32) -> (i32, i32) {
    %c0_i32 = arith.constant 0 : i32
    %c0_i32_0 = arith.constant 0 : i32
    %c0_i32_1 = arith.constant 0 : i32
    return %c0_i32, %c0_i32_0 : i32, i32
  }
  func.func @transform_3(%arg0: i32) -> (i32, i32) {
    %c0_i32 = arith.constant 0 : i32
    %c0_i32_0 = arith.constant 0 : i32
    return %arg0, %c0_i32 : i32, i32
  }
}

</mosaic_0001>

<bundles_post_ra>
// kernel: _lambda_.6
= control target key start
LH: loop header
LB: loop body
LE: loop exit
PB: predicated region body
PF: predicated region fallthrough
CT: control target
= control target key end

     0   :  { %10 = vsyncpa [#allocation3], 0  ;;  %s278_s0 = inlined_call_operand.hbm [shape: f32[16,16], index: 0, kind: input, shape index: {}]   ;;  %s279_s1 = inlined_call_operand.vmem [shape: f32[16,32], index: 1, kind: input, shape index: {}]   ;;  %s280_s2 = inlined_call_operand.vmem [shape: f32[1,32], index: 2, kind: input, shape index: {}]   ;;  %s281_s3 = inlined_call_operand.hbm [shape: f32[32,16], index: 3, kind: input, shape index: {}]   ;;  %s282_s4 = inlined_call_operand.vmem [shape: f32[1,16], index: 4, kind: input, shape index: {}]   ;;  %s283_s5 = inlined_call_operand.vmem [shape: f32[16,16], index: 5, kind: output, shape index: {}]  }
   0x1   :  { %s16_s20 = sshll.u32 %s278_s0, 4  ;;  %s17_s20 = int_to_ptr.hbm [resolvable:$true] %s16_s20 }
   0x2   :  { %11 = vsyncpa [#allocation5], 0  ;;  %s216_s21 = smov [#allocation2]   ;;  %s33_s25 = sshll.u32 %s281_s3, 4  ;;  %s34_s25 = int_to_ptr.hbm [resolvable:$true] %s33_s25 }
   0x3   :  { %s18_s22 = sshll.u32 %s216_s21, 4  ;;  %s217_s26 = smov 128   ;;  %s19_s22 = int_to_ptr.vmem [resolvable:$true] %s18_s22 }
   0x4   :  { %s218_s27 = smov 8   ;;  %s219_s28 = smov [#allocation4]  }
   0x5   :  { %24 = dma.hbm_to_vmem [thread:$0]  %s17_s20, 256, %s19_s22, [#allocation3], %s217_s26, %s217_s26, %s218_s27  }
   0x6   :  { %s35_s29 = sshll.u32 %s219_s28, 4  ;;  %s36_s29 = int_to_ptr.vmem [resolvable:$true] %s35_s29 }
   0x7   :  { %41 = dma.hbm_to_vmem [thread:$0]  %s34_s25, 512, %s36_s29, [#allocation5], %s217_s26, %s217_s26, %s218_s27  }
   0x8   :  { %212 = dma.done.wait [#allocation3], 256  }
   0x9   :  { %213 = vsyncadd [#allocation3], 4294967040 }
   0xa   :  { %214 = dma.done.wait [#allocation5], 512  }
   0xb   :  { %215 = vsyncadd [#allocation5], 4294966784  ;;  %v55_v0 = vld [vmem:[%s279_s1 + $0x8] sm:$0xff]  ;;  %v54_v1 = vld [vmem:[%s279_s1] sm:$0xff]  ;;  %vm60_vm0 = vcmask 130048   ;;  %vm104_vm2 = vcmask 261120  }
   0xc   :  { %v53_v2 = vld [vmem:[#allocation2 + $0x8] sm:$0xff]  ;;  %152 = vmatpush.msra.mxu3 %v55_v0  ;;  %81 = vmatpush.msra.mxu0 %v55_v0  ;;  %v52_v3 = vld [vmem:[#allocation2] sm:$0xff]  ;;  %v97_v6 = vld [vmem:[#allocation4 + $0x8] sm:$0xff] }
   0xd   :  { %v99_v4 = vld [vmem:[#allocation4 + $0x18] sm:$0xff]  ;;  %v98_v5 = vld [vmem:[#allocation4 + $0x10] sm:$0xff]  ;;  %v96_v7 = vld [vmem:[#allocation4] sm:$0xff] }
   0xe   :  { %154 = vmatpush.msra.mxu2 %v99_v4  ;;  %123 = vmatpush.msra.mxu1 %v99_v4  ;;  %v162_v8 = vld [vmem:[%s280_s2] ss:$0 sm:$0xff] }
   0xf   :  { %153 = vmatpush.msra.mxu3 %v54_v1  ;;  %82 = vmatpush.msra.mxu0 %v54_v1  ;;  %v163_v17 = vld [vmem:[%s282_s4] ss:$0 sm:$0xff] }
  0x10   :  { %149 = vmatmul.msk.f32.vlgmr.msra.gmra.mxu3 %vm60_vm0, %v53_v2  ;;  %148 = vmatmul.msk.f32.vlgmr.msra.gmra.mxu0 %vm60_vm0, %v52_v3 }
  0x11   :  { %155 = vmatpush.msra.mxu2 %v98_v5  ;;  %124 = vmatpush.msra.mxu1 %v98_v5 }
  0x13   :  { %156 = vmatpush.msra.mxu2 %v97_v6  ;;  %125 = vmatpush.msra.mxu1 %v97_v6 }
  0x15   :  { %157 = vmatpush.msra.mxu2 %v96_v7  ;;  %126 = vmatpush.msra.mxu1 %v96_v7 }
  0x8d   :  { %v84_v9 = vpop.f32.mrf.mxu0 }
  0x8e   :  { %v85_v10 = vadd.f32 %v162_v8, %v84_v9 }
  0x90   :  { %v92_v11 = vmul.f32 0.01, %v85_v10  ;;  %vm90_vm1 = vcmp.gt.f32.partialorder %v85_v10, 0.0 }
  0x92   :  { %v94_v12 = vsel %vm90_vm1, %v85_v10, %v92_v11 }
  0x93   :  { %v87_v13 = vpop.f32.mrf.mxu3  ;;  %150 = vmatmul.msk.f32.vlgmr.msra.gmra.mxu1 %vm104_vm2, %v94_v12 }
  0x94   :  { %v88_v14 = vadd.f32 %v162_v8, %v87_v13 }
  0x96   :  { %v93_v15 = vmul.f32 0.01, %v88_v14  ;;  %vm91_vm3 = vcmp.gt.f32.partialorder %v88_v14, 0.0 }
  0x98   :  { %v95_v16 = vsel %vm91_vm3, %v88_v14, %v93_v15 }
  0x99   :  { %151 = vmatmul.msk.f32.vlgmr.msra.gmra.mxu2 %vm104_vm2, %v95_v16 }
 0x110   :  { %v128_v18 = vpop.f32.mrf.mxu1 }
 0x111   :  { %v129_v19 = vadd.f32 %v163_v17, %v128_v18 }
 0x113   :  { %vm134_vm4 = vcmp.gt.f32.partialorder %v129_v19, 0.0  ;;  %v136_v20 = vmul.f32 0.01, %v129_v19 }
 0x115   :  { %v138_v21 = vsel %vm134_vm4, %v129_v19, %v136_v20 }
 0x116   :  { %140 = vst.msk [vmem:[%s283_s5] sm:$0xff] %vm60_vm0, %v138_v21 }
 0x11c   :  { %v131_v22 = vpop.f32.mrf.mxu2 }
 0x11d   :  { %v132_v23 = vadd.f32 %v163_v17, %v131_v22 }
 0x11f   :  { %vm135_vm5 = vcmp.gt.f32.partialorder %v132_v23, 0.0  ;;  %v137_v24 = vmul.f32 0.01, %v132_v23 }
 0x121   :  { %v139_v25 = vsel %vm135_vm5, %v132_v23, %v137_v24 }
 0x122   :  { %141 = vst.msk [vmem:[%s283_s5 + $0x8] sm:$0xff] %vm60_vm0, %v139_v25 }
 0x123   :  { %146 = vsyncpa [#allocation3], 1 }
 0x124   :  { %147 = vsyncpa [#allocation5], 1 }

// kernel: _lambda_.5
= control target key start
LH: loop header
LB: loop body
LE: loop exit
PB: predicated region body
PF: predicated region fallthrough
CT: control target
= control target key end

     0   :  { %s689_s12 = smov 0   ;;  %s885_s0 = inlined_call_operand.vmem [shape: f32[512,8], index: 0, kind: input, shape index: {}]   ;;  %s886_s1 = inlined_call_operand.vmem [shape: f32[8,32], index: 1, kind: input, shape index: {}]   ;;  %s887_s2 = inlined_call_operand.vmem [shape: f32[1,32], index: 2, kind: input, shape index: {}]   ;;  %s888_s3 = inlined_call_operand.vmem [shape: f32[512,32], index: 3, kind: output, shape index: {}]  }
   0x1 LB: > { %s606_s13 = sadd.s32 4294967295, %s667_s12   ;;  %p610_p0 = scmp.ge.s32.totalorder %s667_s12, 1  ;;  %s667_s12 = sphi %s689_s12, %s13_s12  }
   0x2   : > { %p138_p1 = scmp.lt.s32.totalorder %s667_s12, 3 }
   0x4   : > { %p139_p2 = pnand %p610_p0, %p138_p1 }
   0x5   : > { %s611_s16 = sshll.u32 (!%p139_p2), %s606_s13, 5 }
   0x6   : > { %142 = sbr.rel (%p139_p2) target bundleno = 210 (0xd2), region = 32  ;;  %p163_p3 = scmp.lt.s32.totalorder (!%p139_p2), %s611_s16, 63 }
   0xb   : > { %v206_v0 = vld [vmem:[%s886_s1] sm:$0xff]  ;;  %s890_s16 = smov (!%p163_p3, %s611_s16), 63  ;;  %vm211_vm0 = vcmask 64512   ;;  %vm517_vm1 = vcmask 261120  }
   0xc   : > { %650 = vmatpush.msra.mxu2 %v206_v0  ;;  %651 = vmatpush.msra.mxu3 %v206_v0  ;;  %s612_s17 = sshll.u32 %s890_s16, 3  ;;  %v777_v33 = vld [vmem:[%s887_s2] ss:$0 sm:$0xff] }
   0xd   : > { %323 = vmatpush.msra.mxu0 %v206_v0  ;;  %649 = vmatpush.msra.mxu1 %v206_v0  ;;  %s708_s20 = scalar_lea.vmem %s885_s0, %s612_s17  ;;  %s786_s25 = scalar_lea.vmem %s888_s3, %s612_s17 }
   0xe   : > { %v190_v1 = vld [vmem:[%s708_s20 + $0x80] sm:$0xff]  ;;  %v191_v5 = vld [vmem:[%s708_s20 + $0x88] sm:$0xff]  ;;  %v192_v9 = vld [vmem:[%s708_s20 + $0x90] sm:$0xff] }
   0xf   : > { %v198_v2 = vld [vmem:[%s708_s20 + $0xc0] sm:$0xff]  ;;  %631 = vmatmul.msk.f32.vlgmr.msra.gmra.mxu2 %vm211_vm0, %v190_v1  ;;  %v199_v6 = vld [vmem:[%s708_s20 + $0xc8] sm:$0xff]  ;;  %v200_v10 = vld [vmem:[%s708_s20 + $0xd0] sm:$0xff] }
  0x10   : > { %v174_v3 = vld [vmem:[%s708_s20] sm:$0xff]  ;;  %639 = vmatmul.msk.f32.vlgmr.msra.gmra.mxu3 %vm211_vm0, %v198_v2  ;;  %v175_v7 = vld [vmem:[%s708_s20 + $0x8] sm:$0xff]  ;;  %v176_v11 = vld [vmem:[%s708_s20 + $0x10] sm:$0xff] }
  0x11   : > { %v182_v4 = vld [vmem:[%s708_s20 + $0x40] sm:$0xff]  ;;  %615 = vmatmul.msk.f32.vlgmr.msra.gmra.mxu0 %vm211_vm0, %v174_v3  ;;  %v183_v8 = vld [vmem:[%s708_s20 + $0x48] sm:$0xff]  ;;  %v184_v12 = vld [vmem:[%s708_s20 + $0x50] sm:$0xff] }
  0x12   : > { %623 = vmatmul.msk.f32.vlgmr.msra.gmra.mxu1 %vm211_vm0, %v182_v4  ;;  %v193_v13 = vld [vmem:[%s708_s20 + $0x98] sm:$0xff]  ;;  %v194_v17 = vld [vmem:[%s708_s20 + $0xa0] sm:$0xff]  ;;  %v195_v21 = vld [vmem:[%s708_s20 + $0xa8] sm:$0xff] }
  0x13   : > { %v201_v14 = vld [vmem:[%s708_s20 + $0xd8] sm:$0xff]  ;;  %v202_v18 = vld [vmem:[%s708_s20 + $0xe0] sm:$0xff]  ;;  %v203_v22 = vld [vmem:[%s708_s20 + $0xe8] sm:$0xff] }
  0x14   : > { %v177_v15 = vld [vmem:[%s708_s20 + $0x18] sm:$0xff]  ;;  %v178_v19 = vld [vmem:[%s708_s20 + $0x20] sm:$0xff]  ;;  %v179_v23 = vld [vmem:[%s708_s20 + $0x28] sm:$0xff] }
  0x15   : > { %v185_v16 = vld [vmem:[%s708_s20 + $0x58] sm:$0xff]  ;;  %v186_v20 = vld [vmem:[%s708_s20 + $0x60] sm:$0xff]  ;;  %v187_v24 = vld [vmem:[%s708_s20 + $0x68] sm:$0xff] }
  0x16   : > { %v196_v25 = vld [vmem:[%s708_s20 + $0xb0] sm:$0xff]  ;;  %v197_v29 = vld [vmem:[%s708_s20 + $0xb8] sm:$0xff] }
  0x17   : > { %632 = vmatmul.msk.f32.gmra.mxu2 %vm211_vm0, %v191_v5  ;;  %v204_v26 = vld [vmem:[%s708_s20 + $0xf0] sm:$0xff]  ;;  %v205_v30 = vld [vmem:[%s708_s20 + $0xf8] sm:$0xff] }
  0x18   : > { %640 = vmatmul.msk.f32.gmra.mxu3 %vm211_vm0, %v199_v6  ;;  %v180_v27 = vld [vmem:[%s708_s20 + $0x30] sm:$0xff]  ;;  %v181_v31 = vld [vmem:[%s708_s20 + $0x38] sm:$0xff] }
  0x19   : > { %616 = vmatmul.msk.f32.gmra.mxu0 %vm211_vm0, %v175_v7  ;;  %v188_v28 = vld [vmem:[%s708_s20 + $0x70] sm:$0xff]  ;;  %v189_v32 = vld [vmem:[%s708_s20 + $0x78] sm:$0xff] }
  0x1a   : > { %624 = vmatmul.msk.f32.gmra.mxu1 %vm211_vm0, %v183_v8 }
  0x1f   : > { %633 = vmatmul.msk.f32.gmra.mxu2 %vm211_vm0, %v192_v9 }
  0x20   : > { %641 = vmatmul.msk.f32.gmra.mxu3 %vm211_vm0, %v200_v10 }
  0x21   : > { %617 = vmatmul.msk.f32.gmra.mxu0 %vm211_vm0, %v176_v11 }
  0x22   : > { %625 = vmatmul.msk.f32.gmra.mxu1 %vm211_vm0, %v184_v12 }
  0x27   : > { %634 = vmatmul.msk.f32.gmra.mxu2 %vm211_vm0, %v193_v13 }
  0x28   : > { %642 = vmatmul.msk.f32.gmra.mxu3 %vm211_vm0, %v201_v14 }
  0x29   : > { %618 = vmatmul.msk.f32.gmra.mxu0 %vm211_vm0, %v177_v15 }
  0x2a   : > { %626 = vmatmul.msk.f32.gmra.mxu1 %vm211_vm0, %v185_v16 }
  0x2f   : > { %635 = vmatmul.msk.f32.gmra.mxu2 %vm211_vm0, %v194_v17 }
  0x30   : > { %643 = vmatmul.msk.f32.gmra.mxu3 %vm211_vm0, %v202_v18 }
  0x31   : > { %619 = vmatmul.msk.f32.gmra.mxu0 %vm211_vm0, %v178_v19 }
  0x32   : > { %627 = vmatmul.msk.f32.gmra.mxu1 %vm211_vm0, %v186_v20 }
  0x37   : > { %636 = vmatmul.msk.f32.gmra.mxu2 %vm211_vm0, %v195_v21 }
  0x38   : > { %644 = vmatmul.msk.f32.gmra.mxu3 %vm211_vm0, %v203_v22 }
  0x39   : > { %620 = vmatmul.msk.f32.gmra.mxu0 %vm211_vm0, %v179_v23 }
  0x3a   : > { %628 = vmatmul.msk.f32.gmra.mxu1 %vm211_vm0, %v187_v24 }
  0x3f   : > { %637 = vmatmul.msk.f32.gmra.mxu2 %vm211_vm0, %v196_v25 }
  0x40   : > { %645 = vmatmul.msk.f32.gmra.mxu3 %vm211_vm0, %v204_v26 }
  0x41   : > { %621 = vmatmul.msk.f32.gmra.mxu0 %vm211_vm0, %v180_v27 }
  0x42   : > { %629 = vmatmul.msk.f32.gmra.mxu1 %vm211_vm0, %v188_v28 }
  0x47   : > { %638 = vmatmul.msk.f32.gmra.mxu2 %vm211_vm0, %v197_v29 }
  0x48   : > { %646 = vmatmul.msk.f32.gmra.mxu3 %vm211_vm0, %v205_v30 }
  0x49   : > { %622 = vmatmul.msk.f32.gmra.mxu0 %vm211_vm0, %v181_v31 }
  0x4a   : > { %630 = vmatmul.msk.f32.gmra.mxu1 %vm211_vm0, %v189_v32 }
  0x8e   : > { %v325_v34 = vpop.f32.mrf.mxu0 }
  0x8f   : > { %v349_v35 = vpop.f32.mrf.mxu1  ;;  %v326_v36 = vadd.f32 %v777_v33, %v325_v34 }
  0x90   : > { %v350_v37 = vadd.f32 %v777_v33, %v349_v35 }
  0x91   : > { %vm421_vm2 = vcmp.gt.f32.partialorder %v326_v36, 0.0  ;;  %v453_v38 = vmul.f32 0.01, %v326_v36 }
  0x92   : > { %vm429_vm3 = vcmp.gt.f32.partialorder %v350_v37, 0.0  ;;  %v461_v39 = vmul.f32 0.01, %v350_v37  ;;  %v373_v42 = vpop.f32.mrf.mxu2 }
  0x93   : > { %v485_v40 = vsel %vm421_vm2, %v326_v36, %v453_v38  ;;  %v397_v43 = vpop.f32.mrf.mxu3  ;;  %v374_v44 = vadd.f32 %v777_v33, %v373_v42 }
  0x94   : > { %v493_v41 = vsel %vm429_vm3, %v350_v37, %v461_v39  ;;  %518 = vst.msk [vmem:[%s786_s25] sm:$0xff] %vm517_vm1, %v485_v40  ;;  %v398_v45 = vadd.f32 %v777_v33, %v397_v43 }
  0x95   : > { %526 = vst.msk [vmem:[%s786_s25 + $0x40] sm:$0xff] %vm517_vm1, %v493_v41  ;;  %vm437_vm4 = vcmp.gt.f32.partialorder %v374_v44, 0.0  ;;  %v469_v46 = vmul.f32 0.01, %v374_v44 }
  0x96   : > { %vm445_vm5 = vcmp.gt.f32.partialorder %v398_v45, 0.0  ;;  %v477_v47 = vmul.f32 0.01, %v398_v45  ;;  %v328_v48 = vpop.f32.mrf.mxu0 }
  0x97   : > { %v352_v49 = vpop.f32.mrf.mxu1  ;;  %v329_v50 = vadd.f32 %v777_v33, %v328_v48  ;;  %v501_v52 = vsel %vm437_vm4, %v374_v44, %v469_v46 }
  0x98   : > { %v353_v51 = vadd.f32 %v777_v33, %v352_v49  ;;  %v509_v53 = vsel %vm445_vm5, %v398_v45, %v477_v47  ;;  %534 = vst.msk [vmem:[%s786_s25 + $0x80] sm:$0xff] %vm517_vm1, %v501_v52 }
  0x99   : > { %vm422_vm6 = vcmp.gt.f32.partialorder %v329_v50, 0.0  ;;  %v454_v54 = vmul.f32 0.01, %v329_v50  ;;  %542 = vst.msk [vmem:[%s786_s25 + $0xc0] sm:$0xff] %vm517_vm1, %v509_v53 }
  0x9a   : > { %vm430_vm7 = vcmp.gt.f32.partialorder %v353_v51, 0.0  ;;  %v462_v55 = vmul.f32 0.01, %v353_v51  ;;  %v376_v57 = vpop.f32.mrf.mxu2 }
  0x9b   : > { %v486_v56 = vsel %vm422_vm6, %v329_v50, %v454_v54  ;;  %v400_v58 = vpop.f32.mrf.mxu3  ;;  %v377_v60 = vadd.f32 %v777_v33, %v376_v57 }
  0x9c   : > { %519 = vst.msk [vmem:[%s786_s25 + $0x8] sm:$0xff] %vm517_vm1, %v486_v56  ;;  %v494_v59 = vsel %vm430_vm7, %v353_v51, %v462_v55  ;;  %v401_v61 = vadd.f32 %v777_v33, %v400_v58 }
  0x9d   : > { %527 = vst.msk [vmem:[%s786_s25 + $0x48] sm:$0xff] %vm517_vm1, %v494_v59  ;;  %vm438_vm8 = vcmp.gt.f32.partialorder %v377_v60, 0.0  ;;  %v470_v62 = vmul.f32 0.01, %v377_v60 }
  0x9e   : > { %vm446_vm9 = vcmp.gt.f32.partialorder %v401_v61, 0.0  ;;  %v478_v63 = vmul.f32 0.01, %v401_v61  ;;  %v331_v0 = vpop.f32.mrf.mxu0 }
  0x9f   : > { %v355_v1 = vpop.f32.mrf.mxu1  ;;  %v332_v2 = vadd.f32 %v777_v33, %v331_v0  ;;  %v502_v4 = vsel %vm438_vm8, %v377_v60, %v470_v62 }
  0xa0   : > { %v356_v3 = vadd.f32 %v777_v33, %v355_v1  ;;  %v510_v5 = vsel %vm446_vm9, %v401_v61, %v478_v63  ;;  %535 = vst.msk [vmem:[%s786_s25 + $0x88] sm:$0xff] %vm517_vm1, %v502_v4 }
  0xa1   : > { %vm423_vm10 = vcmp.gt.f32.partialorder %v332_v2, 0.0  ;;  %v455_v6 = vmul.f32 0.01, %v332_v2  ;;  %543 = vst.msk [vmem:[%s786_s25 + $0xc8] sm:$0xff] %vm517_vm1, %v510_v5 }
  0xa2   : > { %vm431_vm11 = vcmp.gt.f32.partialorder %v356_v3, 0.0  ;;  %v463_v7 = vmul.f32 0.01, %v356_v3  ;;  %v379_v9 = vpop.f32.mrf.mxu2 }
  0xa3   : > { %v487_v8 = vsel %vm423_vm10, %v332_v2, %v455_v6  ;;  %v403_v10 = vpop.f32.mrf.mxu3  ;;  %v380_v12 = vadd.f32 %v777_v33, %v379_v9 }
  0xa4   : > { %520 = vst.msk [vmem:[%s786_s25 + $0x10] sm:$0xff] %vm517_vm1, %v487_v8  ;;  %v495_v11 = vsel %vm431_vm11, %v356_v3, %v463_v7  ;;  %v404_v13 = vadd.f32 %v777_v33, %v403_v10 }
  0xa5   : > { %528 = vst.msk [vmem:[%s786_s25 + $0x50] sm:$0xff] %vm517_vm1, %v495_v11  ;;  %vm439_vm12 = vcmp.gt.f32.partialorder %v380_v12, 0.0  ;;  %v471_v14 = vmul.f32 0.01, %v380_v12 }
  0xa6   : > { %vm447_vm13 = vcmp.gt.f32.partialorder %v404_v13, 0.0  ;;  %v479_v15 = vmul.f32 0.01, %v404_v13  ;;  %v334_v16 = vpop.f32.mrf.mxu0 }
  0xa7   : > { %v358_v17 = vpop.f32.mrf.mxu1  ;;  %v335_v18 = vadd.f32 %v777_v33, %v334_v16  ;;  %v503_v20 = vsel %vm439_vm12, %v380_v12, %v471_v14 }
  0xa8   : > { %v359_v19 = vadd.f32 %v777_v33, %v358_v17  ;;  %v511_v21 = vsel %vm447_vm13, %v404_v13, %v479_v15  ;;  %536 = vst.msk [vmem:[%s786_s25 + $0x90] sm:$0xff] %vm517_vm1, %v503_v20 }
  0xa9   : > { %vm424_vm14 = vcmp.gt.f32.partialorder %v335_v18, 0.0  ;;  %v456_v22 = vmul.f32 0.01, %v335_v18  ;;  %544 = vst.msk [vmem:[%s786_s25 + $0xd0] sm:$0xff] %vm517_vm1, %v511_v21 }
  0xaa   : > { %vm432_vm15 = vcmp.gt.f32.partialorder %v359_v19, 0.0  ;;  %v464_v23 = vmul.f32 0.01, %v359_v19  ;;  %v382_v25 = vpop.f32.mrf.mxu2 }
  0xab   : > { %v488_v24 = vsel %vm424_vm14, %v335_v18, %v456_v22  ;;  %v406_v26 = vpop.f32.mrf.mxu3  ;;  %v383_v28 = vadd.f32 %v777_v33, %v382_v25 }
  0xac   : > { %521 = vst.msk [vmem:[%s786_s25 + $0x18] sm:$0xff] %vm517_vm1, %v488_v24  ;;  %v496_v27 = vsel %vm432_vm15, %v359_v19, %v464_v23  ;;  %v407_v29 = vadd.f32 %v777_v33, %v406_v26 }
  0xad   : > { %529 = vst.msk [vmem:[%s786_s25 + $0x58] sm:$0xff] %vm517_vm1, %v496_v27  ;;  %vm440_vm0 = vcmp.gt.f32.partialorder %v383_v28, 0.0  ;;  %v472_v30 = vmul.f32 0.01, %v383_v28 }
  0xae   : > { %vm448_vm2 = vcmp.gt.f32.partialorder %v407_v29, 0.0  ;;  %v480_v31 = vmul.f32 0.01, %v407_v29  ;;  %v337_v32 = vpop.f32.mrf.mxu0 }
  0xaf   : > { %v361_v34 = vpop.f32.mrf.mxu1  ;;  %v338_v35 = vadd.f32 %v777_v33, %v337_v32  ;;  %v504_v37 = vsel %vm440_vm0, %v383_v28, %v472_v30 }
  0xb0   : > { %v362_v36 = vadd.f32 %v777_v33, %v361_v34  ;;  %v512_v38 = vsel %vm448_vm2, %v407_v29, %v480_v31  ;;  %537 = vst.msk [vmem:[%s786_s25 + $0x98] sm:$0xff] %vm517_vm1, %v504_v37 }
  0xb1   : > { %vm425_vm3 = vcmp.gt.f32.partialorder %v338_v35, 0.0  ;;  %v457_v39 = vmul.f32 0.01, %v338_v35  ;;  %545 = vst.msk [vmem:[%s786_s25 + $0xd8] sm:$0xff] %vm517_vm1, %v512_v38 }
  0xb2   : > { %vm433_vm4 = vcmp.gt.f32.partialorder %v362_v36, 0.0  ;;  %v465_v40 = vmul.f32 0.01, %v362_v36  ;;  %v385_v42 = vpop.f32.mrf.mxu2 }
  0xb3   : > { %v489_v41 = vsel %vm425_vm3, %v338_v35, %v457_v39  ;;  %v409_v43 = vpop.f32.mrf.mxu3  ;;  %v386_v45 = vadd.f32 %v777_v33, %v385_v42 }
  0xb4   : > { %522 = vst.msk [vmem:[%s786_s25 + $0x20] sm:$0xff] %vm517_vm1, %v489_v41  ;;  %v497_v44 = vsel %vm433_vm4, %v362_v36, %v465_v40  ;;  %v410_v46 = vadd.f32 %v777_v33, %v409_v43 }
  0xb5   : > { %530 = vst.msk [vmem:[%s786_s25 + $0x60] sm:$0xff] %vm517_vm1, %v497_v44  ;;  %vm441_vm5 = vcmp.gt.f32.partialorder %v386_v45, 0.0  ;;  %v473_v47 = vmul.f32 0.01, %v386_v45 }
  0xb6   : > { %vm449_vm6 = vcmp.gt.f32.partialorder %v410_v46, 0.0  ;;  %v481_v48 = vmul.f32 0.01, %v410_v46  ;;  %v340_v49 = vpop.f32.mrf.mxu0 }
  0xb7   : > { %v364_v50 = vpop.f32.mrf.mxu1  ;;  %v341_v51 = vadd.f32 %v777_v33, %v340_v49  ;;  %v505_v53 = vsel %vm441_vm5, %v386_v45, %v473_v47 }
  0xb8   : > { %v365_v52 = vadd.f32 %v777_v33, %v364_v50  ;;  %v513_v54 = vsel %vm449_vm6, %v410_v46, %v481_v48  ;;  %538 = vst.msk [vmem:[%s786_s25 + $0xa0] sm:$0xff] %vm517_vm1, %v505_v53 }
  0xb9   : > { %vm426_vm7 = vcmp.gt.f32.partialorder %v341_v51, 0.0  ;;  %v458_v55 = vmul.f32 0.01, %v341_v51  ;;  %546 = vst.msk [vmem:[%s786_s25 + $0xe0] sm:$0xff] %vm517_vm1, %v513_v54 }
  0xba   : > { %vm434_vm8 = vcmp.gt.f32.partialorder %v365_v52, 0.0  ;;  %v466_v56 = vmul.f32 0.01, %v365_v52  ;;  %v388_v58 = vpop.f32.mrf.mxu2 }
  0xbb   : > { %v490_v57 = vsel %vm426_vm7, %v341_v51, %v458_v55  ;;  %v412_v59 = vpop.f32.mrf.mxu3  ;;  %v389_v61 = vadd.f32 %v777_v33, %v388_v58 }
  0xbc   : > { %523 = vst.msk [vmem:[%s786_s25 + $0x28] sm:$0xff] %vm517_vm1, %v490_v57  ;;  %v498_v60 = vsel %vm434_vm8, %v365_v52, %v466_v56  ;;  %v413_v62 = vadd.f32 %v777_v33, %v412_v59 }
  0xbd   : > { %531 = vst.msk [vmem:[%s786_s25 + $0x68] sm:$0xff] %vm517_vm1, %v498_v60  ;;  %vm442_vm9 = vcmp.gt.f32.partialorder %v389_v61, 0.0  ;;  %v474_v63 = vmul.f32 0.01, %v389_v61 }
  0xbe   : > { %vm450_vm10 = vcmp.gt.f32.partialorder %v413_v62, 0.0  ;;  %v482_v0 = vmul.f32 0.01, %v413_v62  ;;  %v343_v1 = vpop.f32.mrf.mxu0 }
  0xbf   : > { %v367_v2 = vpop.f32.mrf.mxu1  ;;  %v344_v3 = vadd.f32 %v777_v33, %v343_v1  ;;  %v506_v5 = vsel %vm442_vm9, %v389_v61, %v474_v63 }
  0xc0   : > { %v368_v4 = vadd.f32 %v777_v33, %v367_v2  ;;  %v514_v6 = vsel %vm450_vm10, %v413_v62, %v482_v0  ;;  %539 = vst.msk [vmem:[%s786_s25 + $0xa8] sm:$0xff] %vm517_vm1, %v506_v5 }
  0xc1   : > { %vm427_vm11 = vcmp.gt.f32.partialorder %v344_v3, 0.0  ;;  %v459_v7 = vmul.f32 0.01, %v344_v3  ;;  %547 = vst.msk [vmem:[%s786_s25 + $0xe8] sm:$0xff] %vm517_vm1, %v514_v6 }
  0xc2   : > { %vm435_vm12 = vcmp.gt.f32.partialorder %v368_v4, 0.0  ;;  %v467_v8 = vmul.f32 0.01, %v368_v4  ;;  %v391_v10 = vpop.f32.mrf.mxu2 }
  0xc3   : > { %v491_v9 = vsel %vm427_vm11, %v344_v3, %v459_v7  ;;  %v415_v11 = vpop.f32.mrf.mxu3  ;;  %v392_v13 = vadd.f32 %v777_v33, %v391_v10 }
  0xc4   : > { %524 = vst.msk [vmem:[%s786_s25 + $0x30] sm:$0xff] %vm517_vm1, %v491_v9  ;;  %v499_v12 = vsel %vm435_vm12, %v368_v4, %v467_v8  ;;  %v416_v14 = vadd.f32 %v777_v33, %v415_v11 }
  0xc5   : > { %532 = vst.msk [vmem:[%s786_s25 + $0x70] sm:$0xff] %vm517_vm1, %v499_v12  ;;  %vm443_vm13 = vcmp.gt.f32.partialorder %v392_v13, 0.0  ;;  %v475_v15 = vmul.f32 0.01, %v392_v13 }
  0xc6   : > { %vm451_vm14 = vcmp.gt.f32.partialorder %v416_v14, 0.0  ;;  %v483_v16 = vmul.f32 0.01, %v416_v14  ;;  %v346_v17 = vpop.f32.mrf.mxu0 }
  0xc7   : > { %v370_v18 = vpop.f32.mrf.mxu1  ;;  %v347_v19 = vadd.f32 %v777_v33, %v346_v17  ;;  %v507_v21 = vsel %vm443_vm13, %v392_v13, %v475_v15 }
  0xc8   : > { %v371_v20 = vadd.f32 %v777_v33, %v370_v18  ;;  %v515_v22 = vsel %vm451_vm14, %v416_v14, %v483_v16  ;;  %540 = vst.msk [vmem:[%s786_s25 + $0xb0] sm:$0xff] %vm517_vm1, %v507_v21 }
  0xc9   : > { %vm428_vm15 = vcmp.gt.f32.partialorder %v347_v19, 0.0  ;;  %v460_v23 = vmul.f32 0.01, %v347_v19  ;;  %548 = vst.msk [vmem:[%s786_s25 + $0xf0] sm:$0xff] %vm517_vm1, %v515_v22 }
  0xca   : > { %vm436_vm0 = vcmp.gt.f32.partialorder %v371_v20, 0.0  ;;  %v468_v24 = vmul.f32 0.01, %v371_v20  ;;  %v394_v26 = vpop.f32.mrf.mxu2 }
  0xcb   : > { %v492_v25 = vsel %vm428_vm15, %v347_v19, %v460_v23  ;;  %v418_v27 = vpop.f32.mrf.mxu3  ;;  %v395_v29 = vadd.f32 %v777_v33, %v394_v26 }
  0xcc   : > { %525 = vst.msk [vmem:[%s786_s25 + $0x38] sm:$0xff] %vm517_vm1, %v492_v25  ;;  %v500_v28 = vsel %vm436_vm0, %v371_v20, %v468_v24  ;;  %v419_v30 = vadd.f32 %v777_v33, %v418_v27 }
  0xcd   : > { %533 = vst.msk [vmem:[%s786_s25 + $0x78] sm:$0xff] %vm517_vm1, %v500_v28  ;;  %vm444_vm2 = vcmp.gt.f32.partialorder %v395_v29, 0.0  ;;  %v476_v31 = vmul.f32 0.01, %v395_v29 }
  0xce   : > { %vm452_vm3 = vcmp.gt.f32.partialorder %v419_v30, 0.0  ;;  %v484_v32 = vmul.f32 0.01, %v419_v30 }
  0xcf   : > { %v508_v34 = vsel %vm444_vm2, %v395_v29, %v476_v31 }
  0xd0   : > { %v516_v35 = vsel %vm452_vm3, %v419_v30, %v484_v32  ;;  %541 = vst.msk [vmem:[%s786_s25 + $0xb8] sm:$0xff] %vm517_vm1, %v508_v34 }
  0xd1   : > { %549 = vst.msk [vmem:[%s786_s25 + $0xf8] sm:$0xff] %vm517_vm1, %v516_v35 }
  0xd2 PF: > { %s13_s12 = sadd.s32 1, %s667_s12  }
  0xd3   : > { %p10_p4 = scmp.ge.s32.totalorder %s13_s12, 4  }
  0xd5   :  { %12 = sbr.rel (!%p10_p4) target bundleno = 1 (0x1), region = 62 }

// kernel: _lambda_.9
= control target key start
LH: loop header
LB: loop body
LE: loop exit
PB: predicated region body
PF: predicated region fallthrough
CT: control target
= control target key end

     0   :  { %s605_s12 = smov 0   ;;  %s810_s0 = inlined_call_operand.vmem [shape: f32[512,32], index: 0, kind: input, shape index: {}]   ;;  %s811_s1 = inlined_call_operand.vmem [shape: f32[32,4], index: 1, kind: input, shape index: {}]   ;;  %s812_s2 = inlined_call_operand.vmem [shape: f32[1,4], index: 2, kind: input, shape index: {}]   ;;  %s813_s3 = inlined_call_operand.vmem [shape: f32[512,4], index: 3, kind: output, shape index: {}]  }
   0x1 LB: > { %s513_s13 = sadd.s32 4294967295, %s583_s12   ;;  %p517_p0 = scmp.ge.s32.totalorder %s583_s12, 1  ;;  %s583_s12 = sphi %s605_s12, %s13_s12  }
   0x2   : > { %p138_p1 = scmp.lt.s32.totalorder %s583_s12, 3 }
   0x4   : > { %p139_p2 = pnand %p517_p0, %p138_p1 }
   0x5   : > { %s518_s18 = sshll.u32 (!%p139_p2), %s513_s13, 5 }
   0x6   : > { %142 = sbr.rel (%p139_p2) target bundleno = 211 (0xd3), region = 32  ;;  %p163_p3 = scmp.lt.s32.totalorder (!%p139_p2), %s518_s18, 63 }
   0xb   : > { %v209_v0 = vld [vmem:[%s811_s1 + $0x18] sm:$0xff]  ;;  %v208_v1 = vld [vmem:[%s811_s1 + $0x10] sm:$0xff]  ;;  %v207_v2 = vld [vmem:[%s811_s1 + $0x8] sm:$0xff]  ;;  %s815_s18 = smov (!%p163_p3, %s518_s18), 63  ;;  %vm214_vm0 = vcmask 261120   ;;  %vm424_vm1 = vcmask 31744  }
   0xc   : > { %557 = vmatpush.msra.mxu2 %v209_v0  ;;  %558 = vmatpush.msra.mxu3 %v209_v0  ;;  %v206_v3 = vld [vmem:[%s811_s1] sm:$0xff]  ;;  %s519_s23 = sshll.u32 %s815_s18, 3 }
   0xd   : > { %323 = vmatpush.msra.mxu0 %v209_v0  ;;  %556 = vmatpush.msra.mxu1 %v209_v0  ;;  %s633_s26 = scalar_lea.vmem %s810_s0, %s519_s23  ;;  %v702_v36 = vld [vmem:[%s812_s2] ss:$0 sm:$0xff]  ;;  %s709_s4 = scalar_lea.vmem %s813_s3, %s519_s23 }
   0xe   : > { %560 = vmatpush.msra.mxu2 %v208_v1  ;;  %561 = vmatpush.msra.mxu3 %v208_v1  ;;  %v190_v4 = vld [vmem:[%s633_s26 + $0x80] sm:$0xff]  ;;  %v191_v8 = vld [vmem:[%s633_s26 + $0x88] sm:$0xff]  ;;  %v192_v12 = vld [vmem:[%s633_s26 + $0x90] sm:$0xff] }
   0xf   : > { %324 = vmatpush.msra.mxu0 %v208_v1  ;;  %559 = vmatpush.msra.mxu1 %v208_v1  ;;  %v198_v5 = vld [vmem:[%s633_s26 + $0xc0] sm:$0xff]  ;;  %v199_v9 = vld [vmem:[%s633_s26 + $0xc8] sm:$0xff]  ;;  %v200_v13 = vld [vmem:[%s633_s26 + $0xd0] sm:$0xff] }
  0x10   : > { %563 = vmatpush.msra.mxu2 %v207_v2  ;;  %564 = vmatpush.msra.mxu3 %v207_v2  ;;  %v174_v6 = vld [vmem:[%s633_s26] sm:$0xff]  ;;  %v175_v10 = vld [vmem:[%s633_s26 + $0x8] sm:$0xff]  ;;  %v176_v14 = vld [vmem:[%s633_s26 + $0x10] sm:$0xff] }
  0x11   : > { %325 = vmatpush.msra.mxu0 %v207_v2  ;;  %562 = vmatpush.msra.mxu1 %v207_v2  ;;  %v182_v7 = vld [vmem:[%s633_s26 + $0x40] sm:$0xff]  ;;  %v183_v11 = vld [vmem:[%s633_s26 + $0x48] sm:$0xff]  ;;  %v184_v15 = vld [vmem:[%s633_s26 + $0x50] sm:$0xff] }
  0x12   : > { %566 = vmatpush.msra.mxu2 %v206_v3  ;;  %567 = vmatpush.msra.mxu3 %v206_v3  ;;  %v193_v16 = vld [vmem:[%s633_s26 + $0x98] sm:$0xff]  ;;  %v194_v20 = vld [vmem:[%s633_s26 + $0xa0] sm:$0xff]  ;;  %v195_v24 = vld [vmem:[%s633_s26 + $0xa8] sm:$0xff] }
  0x13   : > { %538 = vmatmul.msk.f32.vlgmr.msra.gmra.mxu2 %vm214_vm0, %v190_v4  ;;  %546 = vmatmul.msk.f32.vlgmr.msra.gmra.mxu3 %vm214_vm0, %v198_v5  ;;  %v201_v17 = vld [vmem:[%s633_s26 + $0xd8] sm:$0xff]  ;;  %v202_v21 = vld [vmem:[%s633_s26 + $0xe0] sm:$0xff]  ;;  %v203_v25 = vld [vmem:[%s633_s26 + $0xe8] sm:$0xff] }
  0x14   : > { %326 = vmatpush.msra.mxu0 %v206_v3  ;;  %565 = vmatpush.msra.mxu1 %v206_v3  ;;  %v177_v18 = vld [vmem:[%s633_s26 + $0x18] sm:$0xff]  ;;  %v178_v22 = vld [vmem:[%s633_s26 + $0x20] sm:$0xff]  ;;  %v179_v26 = vld [vmem:[%s633_s26 + $0x28] sm:$0xff] }
  0x15   : > { %522 = vmatmul.msk.f32.vlgmr.msra.gmra.mxu0 %vm214_vm0, %v174_v6  ;;  %530 = vmatmul.msk.f32.vlgmr.msra.gmra.mxu1 %vm214_vm0, %v182_v7  ;;  %v185_v19 = vld [vmem:[%s633_s26 + $0x58] sm:$0xff]  ;;  %v186_v23 = vld [vmem:[%s633_s26 + $0x60] sm:$0xff]  ;;  %v187_v27 = vld [vmem:[%s633_s26 + $0x68] sm:$0xff] }
  0x16   : > { %v196_v28 = vld [vmem:[%s633_s26 + $0xb0] sm:$0xff]  ;;  %v197_v32 = vld [vmem:[%s633_s26 + $0xb8] sm:$0xff] }
  0x17   : > { %v204_v29 = vld [vmem:[%s633_s26 + $0xf0] sm:$0xff]  ;;  %v205_v33 = vld [vmem:[%s633_s26 + $0xf8] sm:$0xff] }
  0x18   : > { %v180_v30 = vld [vmem:[%s633_s26 + $0x30] sm:$0xff]  ;;  %v181_v34 = vld [vmem:[%s633_s26 + $0x38] sm:$0xff] }
  0x19   : > { %v188_v31 = vld [vmem:[%s633_s26 + $0x70] sm:$0xff]  ;;  %v189_v35 = vld [vmem:[%s633_s26 + $0x78] sm:$0xff] }
  0x1b   : > { %539 = vmatmul.msk.f32.gmra.mxu2 %vm214_vm0, %v191_v8  ;;  %547 = vmatmul.msk.f32.gmra.mxu3 %vm214_vm0, %v199_v9 }
  0x1d   : > { %523 = vmatmul.msk.f32.gmra.mxu0 %vm214_vm0, %v175_v10  ;;  %531 = vmatmul.msk.f32.gmra.mxu1 %vm214_vm0, %v183_v11 }
  0x23   : > { %540 = vmatmul.msk.f32.gmra.mxu2 %vm214_vm0, %v192_v12  ;;  %548 = vmatmul.msk.f32.gmra.mxu3 %vm214_vm0, %v200_v13 }
  0x25   : > { %524 = vmatmul.msk.f32.gmra.mxu0 %vm214_vm0, %v176_v14  ;;  %532 = vmatmul.msk.f32.gmra.mxu1 %vm214_vm0, %v184_v15 }
  0x2b   : > { %541 = vmatmul.msk.f32.gmra.mxu2 %vm214_vm0, %v193_v16  ;;  %549 = vmatmul.msk.f32.gmra.mxu3 %vm214_vm0, %v201_v17 }
  0x2d   : > { %525 = vmatmul.msk.f32.gmra.mxu0 %vm214_vm0, %v177_v18  ;;  %533 = vmatmul.msk.f32.gmra.mxu1 %vm214_vm0, %v185_v19 }
  0x33   : > { %542 = vmatmul.msk.f32.gmra.mxu2 %vm214_vm0, %v194_v20  ;;  %550 = vmatmul.msk.f32.gmra.mxu3 %vm214_vm0, %v202_v21 }
  0x35   : > { %526 = vmatmul.msk.f32.gmra.mxu0 %vm214_vm0, %v178_v22  ;;  %534 = vmatmul.msk.f32.gmra.mxu1 %vm214_vm0, %v186_v23 }
  0x3b   : > { %543 = vmatmul.msk.f32.gmra.mxu2 %vm214_vm0, %v195_v24  ;;  %551 = vmatmul.msk.f32.gmra.mxu3 %vm214_vm0, %v203_v25 }
  0x3d   : > { %527 = vmatmul.msk.f32.gmra.mxu0 %vm214_vm0, %v179_v26  ;;  %535 = vmatmul.msk.f32.gmra.mxu1 %vm214_vm0, %v187_v27 }
  0x43   : > { %544 = vmatmul.msk.f32.gmra.mxu2 %vm214_vm0, %v196_v28  ;;  %552 = vmatmul.msk.f32.gmra.mxu3 %vm214_vm0, %v204_v29 }
  0x45   : > { %528 = vmatmul.msk.f32.gmra.mxu0 %vm214_vm0, %v180_v30  ;;  %536 = vmatmul.msk.f32.gmra.mxu1 %vm214_vm0, %v188_v31 }
  0x4b   : > { %545 = vmatmul.msk.f32.gmra.mxu2 %vm214_vm0, %v197_v32  ;;  %553 = vmatmul.msk.f32.gmra.mxu3 %vm214_vm0, %v205_v33 }
  0x4d   : > { %529 = vmatmul.msk.f32.gmra.mxu0 %vm214_vm0, %v181_v34  ;;  %537 = vmatmul.msk.f32.gmra.mxu1 %vm214_vm0, %v189_v35 }
  0x92   : > { %v328_v37 = vpop.f32.mrf.mxu0  ;;  %v352_v38 = vpop.f32.mrf.mxu1 }
  0x93   : > { %v329_v39 = vadd.f32 %v702_v36, %v328_v37  ;;  %v353_v40 = vadd.f32 %v702_v36, %v352_v38 }
  0x95   : > { %425 = vst.msk [vmem:[%s709_s4] sm:$0xff] %vm424_vm1, %v329_v39 }
  0x96   : > { %433 = vst.msk [vmem:[%s709_s4 + $0x40] sm:$0xff] %vm424_vm1, %v353_v40  ;;  %v376_v41 = vpop.f32.mrf.mxu2  ;;  %v400_v42 = vpop.f32.mrf.mxu3 }
  0x97   : > { %v377_v43 = vadd.f32 %v702_v36, %v376_v41  ;;  %v401_v44 = vadd.f32 %v702_v36, %v400_v42 }
  0x99   : > { %441 = vst.msk [vmem:[%s709_s4 + $0x80] sm:$0xff] %vm424_vm1, %v377_v43 }
  0x9a   : > { %449 = vst.msk [vmem:[%s709_s4 + $0xc0] sm:$0xff] %vm424_vm1, %v401_v44  ;;  %v331_v45 = vpop.f32.mrf.mxu0  ;;  %v355_v46 = vpop.f32.mrf.mxu1 }
  0x9b   : > { %v332_v47 = vadd.f32 %v702_v36, %v331_v45  ;;  %v356_v48 = vadd.f32 %v702_v36, %v355_v46 }
  0x9d   : > { %426 = vst.msk [vmem:[%s709_s4 + $0x8] sm:$0xff] %vm424_vm1, %v332_v47 }
  0x9e   : > { %434 = vst.msk [vmem:[%s709_s4 + $0x48] sm:$0xff] %vm424_vm1, %v356_v48  ;;  %v379_v49 = vpop.f32.mrf.mxu2  ;;  %v403_v50 = vpop.f32.mrf.mxu3 }
  0x9f   : > { %v380_v51 = vadd.f32 %v702_v36, %v379_v49  ;;  %v404_v52 = vadd.f32 %v702_v36, %v403_v50 }
  0xa1   : > { %442 = vst.msk [vmem:[%s709_s4 + $0x88] sm:$0xff] %vm424_vm1, %v380_v51 }
  0xa2   : > { %450 = vst.msk [vmem:[%s709_s4 + $0xc8] sm:$0xff] %vm424_vm1, %v404_v52  ;;  %v334_v53 = vpop.f32.mrf.mxu0  ;;  %v358_v54 = vpop.f32.mrf.mxu1 }
  0xa3   : > { %v335_v55 = vadd.f32 %v702_v36, %v334_v53  ;;  %v359_v56 = vadd.f32 %v702_v36, %v358_v54 }
  0xa5   : > { %427 = vst.msk [vmem:[%s709_s4 + $0x10] sm:$0xff] %vm424_vm1, %v335_v55 }
  0xa6   : > { %435 = vst.msk [vmem:[%s709_s4 + $0x50] sm:$0xff] %vm424_vm1, %v359_v56  ;;  %v382_v57 = vpop.f32.mrf.mxu2  ;;  %v406_v58 = vpop.f32.mrf.mxu3 }
  0xa7   : > { %v383_v59 = vadd.f32 %v702_v36, %v382_v57  ;;  %v407_v60 = vadd.f32 %v702_v36, %v406_v58 }
  0xa9   : > { %443 = vst.msk [vmem:[%s709_s4 + $0x90] sm:$0xff] %vm424_vm1, %v383_v59 }
  0xaa   : > { %451 = vst.msk [vmem:[%s709_s4 + $0xd0] sm:$0xff] %vm424_vm1, %v407_v60  ;;  %v337_v61 = vpop.f32.mrf.mxu0  ;;  %v361_v62 = vpop.f32.mrf.mxu1 }
  0xab   : > { %v338_v63 = vadd.f32 %v702_v36, %v337_v61  ;;  %v362_v0 = vadd.f32 %v702_v36, %v361_v62 }
  0xad   : > { %428 = vst.msk [vmem:[%s709_s4 + $0x18] sm:$0xff] %vm424_vm1, %v338_v63 }
  0xae   : > { %436 = vst.msk [vmem:[%s709_s4 + $0x58] sm:$0xff] %vm424_vm1, %v362_v0  ;;  %v385_v1 = vpop.f32.mrf.mxu2  ;;  %v409_v2 = vpop.f32.mrf.mxu3 }
  0xaf   : > { %v386_v3 = vadd.f32 %v702_v36, %v385_v1  ;;  %v410_v4 = vadd.f32 %v702_v36, %v409_v2 }
  0xb1   : > { %444 = vst.msk [vmem:[%s709_s4 + $0x98] sm:$0xff] %vm424_vm1, %v386_v3 }
  0xb2   : > { %452 = vst.msk [vmem:[%s709_s4 + $0xd8] sm:$0xff] %vm424_vm1, %v410_v4  ;;  %v340_v5 = vpop.f32.mrf.mxu0  ;;  %v364_v6 = vpop.f32.mrf.mxu1 }
  0xb3   : > { %v341_v7 = vadd.f32 %v702_v36, %v340_v5  ;;  %v365_v8 = vadd.f32 %v702_v36, %v364_v6 }
  0xb5   : > { %429 = vst.msk [vmem:[%s709_s4 + $0x20] sm:$0xff] %vm424_vm1, %v341_v7 }
  0xb6   : > { %437 = vst.msk [vmem:[%s709_s4 + $0x60] sm:$0xff] %vm424_vm1, %v365_v8  ;;  %v388_v9 = vpop.f32.mrf.mxu2  ;;  %v412_v10 = vpop.f32.mrf.mxu3 }
  0xb7   : > { %v389_v11 = vadd.f32 %v702_v36, %v388_v9  ;;  %v413_v12 = vadd.f32 %v702_v36, %v412_v10 }
  0xb9   : > { %445 = vst.msk [vmem:[%s709_s4 + $0xa0] sm:$0xff] %vm424_vm1, %v389_v11 }
  0xba   : > { %453 = vst.msk [vmem:[%s709_s4 + $0xe0] sm:$0xff] %vm424_vm1, %v413_v12  ;;  %v343_v13 = vpop.f32.mrf.mxu0  ;;  %v367_v14 = vpop.f32.mrf.mxu1 }
  0xbb   : > { %v344_v15 = vadd.f32 %v702_v36, %v343_v13  ;;  %v368_v16 = vadd.f32 %v702_v36, %v367_v14 }
  0xbd   : > { %430 = vst.msk [vmem:[%s709_s4 + $0x28] sm:$0xff] %vm424_vm1, %v344_v15 }
  0xbe   : > { %438 = vst.msk [vmem:[%s709_s4 + $0x68] sm:$0xff] %vm424_vm1, %v368_v16  ;;  %v391_v17 = vpop.f32.mrf.mxu2  ;;  %v415_v18 = vpop.f32.mrf.mxu3 }
  0xbf   : > { %v392_v19 = vadd.f32 %v702_v36, %v391_v17  ;;  %v416_v20 = vadd.f32 %v702_v36, %v415_v18 }
  0xc1   : > { %446 = vst.msk [vmem:[%s709_s4 + $0xa8] sm:$0xff] %vm424_vm1, %v392_v19 }
  0xc2   : > { %454 = vst.msk [vmem:[%s709_s4 + $0xe8] sm:$0xff] %vm424_vm1, %v416_v20  ;;  %v346_v21 = vpop.f32.mrf.mxu0  ;;  %v370_v22 = vpop.f32.mrf.mxu1 }
  0xc3   : > { %v347_v23 = vadd.f32 %v702_v36, %v346_v21  ;;  %v371_v24 = vadd.f32 %v702_v36, %v370_v22 }
  0xc5   : > { %431 = vst.msk [vmem:[%s709_s4 + $0x30] sm:$0xff] %vm424_vm1, %v347_v23 }
  0xc6   : > { %439 = vst.msk [vmem:[%s709_s4 + $0x70] sm:$0xff] %vm424_vm1, %v371_v24  ;;  %v394_v25 = vpop.f32.mrf.mxu2  ;;  %v418_v26 = vpop.f32.mrf.mxu3 }
  0xc7   : > { %v395_v27 = vadd.f32 %v702_v36, %v394_v25  ;;  %v419_v28 = vadd.f32 %v702_v36, %v418_v26 }
  0xc9   : > { %447 = vst.msk [vmem:[%s709_s4 + $0xb0] sm:$0xff] %vm424_vm1, %v395_v27 }
  0xca   : > { %455 = vst.msk [vmem:[%s709_s4 + $0xf0] sm:$0xff] %vm424_vm1, %v419_v28  ;;  %v349_v29 = vpop.f32.mrf.mxu0  ;;  %v373_v30 = vpop.f32.mrf.mxu1 }
  0xcb   : > { %v350_v31 = vadd.f32 %v702_v36, %v349_v29  ;;  %v374_v32 = vadd.f32 %v702_v36, %v373_v30 }
  0xcd   : > { %432 = vst.msk [vmem:[%s709_s4 + $0x38] sm:$0xff] %vm424_vm1, %v350_v31 }
  0xce   : > { %440 = vst.msk [vmem:[%s709_s4 + $0x78] sm:$0xff] %vm424_vm1, %v374_v32  ;;  %v397_v33 = vpop.f32.mrf.mxu2  ;;  %v421_v34 = vpop.f32.mrf.mxu3 }
  0xcf   : > { %v398_v35 = vadd.f32 %v702_v36, %v397_v33  ;;  %v422_v37 = vadd.f32 %v702_v36, %v421_v34 }
  0xd1   : > { %448 = vst.msk [vmem:[%s709_s4 + $0xb8] sm:$0xff] %vm424_vm1, %v398_v35 }
  0xd2   : > { %456 = vst.msk [vmem:[%s709_s4 + $0xf8] sm:$0xff] %vm424_vm1, %v422_v37 }
  0xd3 PF: > { %s13_s12 = sadd.s32 1, %s583_s12  }
  0xd4   : > { %p10_p4 = scmp.ge.s32.totalorder %s13_s12, 4  }
  0xd6   :  { %12 = sbr.rel (!%p10_p4) target bundleno = 1 (0x1), region = 62 }

// kernel: _lambda_.7
= control target key start
LH: loop header
LB: loop body
LE: loop exit
PB: predicated region body
PF: predicated region fallthrough
CT: control target
= control target key end

     0   :  { %s2044_s18 = smov 0   ;;  %s2641_s0 = inlined_call_operand.vmem [shape: f32[16,16], index: 0, kind: input, shape index: {}, may-alias: {0,2}]   ;;  %s2642_s1 = inlined_call_operand.vmem [shape: f32[16,32,32], index: 1, kind: input, shape index: {}, may-alias: {1,3}]   ;;  %s2643_s2 = inlined_call_operand.vmem [shape: f32[16,16], index: 2, kind: input, shape index: {}, may-alias: {0,2}]   ;;  %s2644_s3 = inlined_call_operand.vmem [shape: f32[16,32,32], index: 3, kind: input, shape index: {}, may-alias: {1,3}]   ;;  %s2645_s4 = inlined_call_operand.vmem [shape: f32[32,32], index: 4, kind: input, shape index: {}]   ;;  %s2646_s5 = inlined_call_operand.vmem [shape: f32[16,32], index: 5, kind: input, shape index: {}]   ;;  %s2647_s6 = inlined_call_operand.vmem [shape: f32[1,32], index: 6, kind: input, shape index: {}]   ;;  %s2648_s7 = inlined_call_operand.vmem [shape: f32[32,16], index: 7, kind: input, shape index: {}]   ;;  %s2649_s8 = inlined_call_operand.vmem [shape: f32[1,16], index: 8, kind: input, shape index: {}]   ;;  %s2650_s9 = inlined_call_operand.vmem [shape: f32[32,32], index: 9, kind: input, shape index: {}]   ;;  %s2651_s10 = inlined_call_operand.vmem [shape: f32[16,32], index: 10, kind: input, shape index: {}]   ;;  %s2652_s11 = inlined_call_operand.vmem [shape: f32[1,32], index: 11, kind: input, shape index: {}]   ;;  %s2653_s12 = inlined_call_operand.vmem [shape: f32[32,32], index: 12, kind: input, shape index: {}]   ;;  %s2654_s13 = inlined_call_operand.vmem [shape: f32[1,32], index: 13, kind: input, shape index: {}]   ;;  %s2655_s14 = inlined_call_operand.vmem [shape: f32[16,16], index: 14, kind: output, shape index: {0}]   ;;  %s2656_s15 = inlined_call_operand.vmem [shape: f32[16,32,32], index: 15, kind: output, shape index: {1}]  }
   0x1 LB: > { %s1823_s19 = sadd.s32 4294967295, %s1962_s18   ;;  %p1827_p0 = scmp.ge.s32.totalorder %s1962_s18, 1  ;;  %s1962_s18 = sphi %s2044_s18, %s26_s18  }
   0x2   : > { %p472_p1 = scmp.lt.s32.totalorder %s1962_s18, 3 }
   0x4   : > { %p473_p2 = pnand %p1827_p0, %p472_p1 }
   0x5   : > { %p540_p3 = scmp.lt.s32.totalorder (!%p473_p2), %s1823_s19, 1  ;;  %s1829_s24 = sshll.u32 (!%p473_p2), %s1823_s19, 3 }
   0x6   : > { %476 = sbr.rel (%p473_p2) target bundleno = 739 (0x2e3), region = 76  ;;  %p545_p4 = scmp.lt.s32.totalorder (!%p473_p2), %s1829_s24, 15 }
   0xb   : > { %v716_v0 = vld [vmem:[%s2646_s5 + $0x8] sm:$0xff]  ;;  %v715_v1 = vld [vmem:[%s2646_s5] sm:$0xff]  ;;  %v714_v2 = vld [vmem:[%s2645_s4 + $0x18] sm:$0xff]  ;;  %s2658_s19 = smov (!%p540_p3, %s1823_s19), 1  ;;  %s2660_s24 = smov (!%p545_p4, %s1829_s24), 15  ;;  %vm717_vm0 = vcmask 130048  }
   0xc   : > { %735 = vmatpush.msra.mxu1 %v716_v0  ;;  %v713_v3 = vld [vmem:[%s2645_s4 + $0x10] sm:$0xff]  ;;  %s2064_s29 = sshll.u32 %s2658_s19, 3  ;;  %v712_v4 = vld [vmem:[%s2645_s4 + $0x8] sm:$0xff]  ;;  %s2075_s22 = sshll.u32 %s2660_s24, 5  ;;  %vm606_vm1 = vcmask 261120   ;;  %v711_v6 = vld [vmem:[%s2645_s4] sm:$0xff] }
   0xd   : > { %s543_s17 = scalar_lea.vmem %s2641_s0, %s2064_s29  ;;  %s2086_s27 = scalar_lea.vmem %s2642_s1, %s2075_s22  ;;  %vm749_vm2 = vcmask 1041409   ;;  %vm751_vm3 = vcmask 1042434   ;;  %vm753_vm4 = vcmask 1043459   ;;  %vm755_vm5 = vcmask 1044484  }
   0xe   : > { %736 = vmatpush.msra.mxu1 %v715_v1  ;;  %v2073_v5 = vld [vmem:[%s543_s17] sm:$0xff]  ;;  %v2092_v8 = vld [vmem:[%s2086_s27 + $0x8] sm:$0xff]  ;;  %v2095_v9 = vld [vmem:[%s2086_s27 + $0x10] sm:$0xff]  ;;  %vm757_vm6 = vcmask 1045509   ;;  %vm759_vm7 = vcmask 1046534   ;;  %vm761_vm8 = vcmask 1047559   ;;  %s554_s17 = scalar_lea.vmem %s2643_s2, %s2064_s29  ;;  %s565_s19 = scalar_lea.vmem %s2655_s14, %s2064_s29 }
   0xf   : > { %1840 = vmatmul.msk.f32.vlgmr.msra.gmra.mxu1 %vm717_vm0, %v2073_v5  ;;  %v2089_v7 = vld [vmem:[%s2086_s27] sm:$0xff]  ;;  %v2098_v10 = vld [vmem:[%s2086_s27 + $0x18] sm:$0xff]  ;;  %v2104_v12 = vld [vmem:[%s2086_s27 + $0x28] sm:$0xff]  ;;  %v608_v14 = vsel %vm606_vm1, %v2092_v8, 0.0  ;;  %v610_v15 = vsel %vm606_vm1, %v2095_v9, 0.0  ;;  %s2471_s25 = scalar_lea.vmem %s2644_s3, %s2075_s22  ;;  %s2481_s28 = scalar_lea.vmem %s2656_s15, %s2075_s22 }
  0x10   : > { %777 = vmatpush.msrb.mxu1 %v714_v2  ;;  %v2101_v11 = vld [vmem:[%s2086_s27 + $0x20] sm:$0xff]  ;;  %v607_v13 = vsel %vm606_vm1, %v2089_v7, 0.0  ;;  %v2113_v16 = vld [vmem:[%s2086_s27 + $0x30] sm:$0xff]  ;;  %v2116_v17 = vld [vmem:[%s2086_s27 + $0x38] sm:$0xff]  ;;  %v612_v20 = vsel %vm606_vm1, %v2098_v10, 0.0  ;;  %v621_v22 = vsel %vm606_vm1, %v2104_v12, 0.0 }
  0x11   : > { %v2119_v18 = vld [vmem:[%s2086_s27 + $0x40] sm:$0xff]  ;;  %v609_v19 = vadd.f32 %v608_v14, %v607_v13  ;;  %v620_v21 = vsel %vm606_vm1, %v2101_v11, 0.0  ;;  %v2128_v23 = vld [vmem:[%s2086_s27 + $0x48] sm:$0xff]  ;;  %v2131_v24 = vld [vmem:[%s2086_s27 + $0x50] sm:$0xff]  ;;  %v623_v27 = vsel %vm606_vm1, %v2113_v16, 0.0  ;;  %v625_v28 = vsel %vm606_vm1, %v2116_v17, 0.0 }
  0x12   : > { %778 = vmatpush.msrb.mxu1 %v713_v3  ;;  %v2134_v25 = vld [vmem:[%s2086_s27 + $0x58] sm:$0xff]  ;;  %v622_v26 = vadd.f32 %v621_v22, %v620_v21  ;;  %v633_v29 = vsel %vm606_vm1, %v2119_v18, 0.0  ;;  %v2143_v30 = vld [vmem:[%s2086_s27 + $0x60] sm:$0xff]  ;;  %v2146_v31 = vld [vmem:[%s2086_s27 + $0x68] sm:$0xff]  ;;  %v634_v34 = vsel %vm606_vm1, %v2128_v23, 0.0  ;;  %v636_v35 = vsel %vm606_vm1, %v2131_v24, 0.0 }
  0x13   : > { %v2149_v32 = vld [vmem:[%s2086_s27 + $0x70] sm:$0xff]  ;;  %v611_v33 = vadd.f32 %v610_v15, %v609_v19  ;;  %v638_v36 = vsel %vm606_vm1, %v2134_v25, 0.0  ;;  %v2158_v37 = vld [vmem:[%s2086_s27 + $0x78] sm:$0xff]  ;;  %v2161_v38 = vld [vmem:[%s2086_s27 + $0x80] sm:$0xff]  ;;  %v635_v41 = vadd.f32 %v634_v34, %v633_v29  ;;  %v646_v42 = vsel %vm606_vm1, %v2143_v30, 0.0 }
  0x14   : > { %779 = vmatpush.msrb.mxu1 %v712_v4  ;;  %v2164_v39 = vld [vmem:[%s2086_s27 + $0x88] sm:$0xff]  ;;  %v624_v40 = vadd.f32 %v623_v27, %v622_v26  ;;  %v647_v43 = vsel %vm606_vm1, %v2146_v31, 0.0  ;;  %v2171_v44 = vld [vmem:[%s2086_s27 + $0x90] sm:$0xff]  ;;  %v2174_v45 = vld [vmem:[%s2086_s27 + $0x98] sm:$0xff]  ;;  %v649_v49 = vsel %vm606_vm1, %v2149_v32, 0.0  ;;  %v651_v50 = vsel %vm606_vm1, %v2158_v37, 0.0 }
  0x15   : > { %v2177_v46 = vld [vmem:[%s2086_s27 + $0xa0] sm:$0xff]  ;;  %v613_v47 = vadd.f32 %v612_v20, %v611_v33  ;;  %v648_v48 = vadd.f32 %v647_v43, %v646_v42  ;;  %v2184_v51 = vld [vmem:[%s2086_s27 + $0xa8] sm:$0xff]  ;;  %v637_v53 = vadd.f32 %v636_v35, %v635_v41  ;;  %v659_v54 = vsel %vm606_vm1, %v2161_v38, 0.0  ;;  %v2191_v56 = vld [vmem:[%s2086_s27 + $0xb0] sm:$0xff] }
  0x16   : > { %780 = vmatpush.msrb.mxu1 %v711_v6  ;;  %v626_v52 = vadd.f32 %v625_v28, %v624_v40  ;;  %v660_v55 = vsel %vm606_vm1, %v2164_v39, 0.0  ;;  %v662_v60 = vsel %vm606_vm1, %v2171_v44, 0.0  ;;  %v2196_v61 = vld [vmem:[%s2086_s27 + $0xb8] sm:$0xff]  ;;  %v664_v0 = vsel %vm606_vm1, %v2174_v45, 0.0  ;;  %v2203_v2 = vld [vmem:[%s2086_s27 + $0xc0] sm:$0xff]  ;;  %v2208_v14 = vld [vmem:[%s2086_s27 + $0xc8] sm:$0xff] }
  0x17   : > { %v614_v57 = vrot.slane %v613_v47, 4  ;;  %v650_v58 = vadd.f32 %v649_v49, %v648_v48  ;;  %v661_v59 = vadd.f32 %v660_v55, %v659_v54  ;;  %v639_v63 = vadd.f32 %v638_v36, %v637_v53  ;;  %v2215_v29 = vld [vmem:[%s2086_s27 + $0xd0] sm:$0xff] }
  0x18   : > { %v627_v62 = vrot.slane %v626_v52, 4  ;;  %v672_v1 = vsel %vm606_vm1, %v2177_v46, 0.0  ;;  %v673_v13 = vsel %vm606_vm1, %v2184_v51, 0.0  ;;  %v675_v21 = vsel %vm606_vm1, %v2191_v56, 0.0 }
  0x19   : > { %v615_v3 = vadd.f32 %v614_v57, %v613_v47  ;;  %v652_v4 = vadd.f32 %v651_v50, %v650_v58  ;;  %v663_v6 = vadd.f32 %v662_v60, %v661_v59  ;;  %v640_v19 = vrot.slane %v639_v63, 4  ;;  %v2222_v47 = vld [vmem:[%s2086_s27 + $0xd8] sm:$0xff]  ;;  %v2227_v58 = vld [vmem:[%s2086_s27 + $0xe0] sm:$0xff]  ;;  %v2230_v59 = vld [vmem:[%s2086_s27 + $0xe8] sm:$0xff] }
  0x1a   : > { %v628_v15 = vadd.f32 %v627_v62, %v626_v52  ;;  %v674_v20 = vadd.f32 %v673_v13, %v672_v1  ;;  %v677_v28 = vsel %vm606_vm1, %v2196_v61, 0.0  ;;  %v685_v36 = vsel %vm606_vm1, %v2203_v2, 0.0  ;;  %v2235_v13 = vld [vmem:[%s2086_s27 + $0xf0] sm:$0xff] }
  0x1b   : > { %v616_v22 = vrot.slane %v615_v3, 2  ;;  %v653_v26 = vrot.slane %v652_v4, 4  ;;  %v665_v27 = vadd.f32 %v664_v0, %v663_v6  ;;  %v641_v34 = vadd.f32 %v640_v19, %v639_v63 }
  0x1c   : > { %v629_v33 = vrot.slane %v628_v15, 2  ;;  %v676_v35 = vadd.f32 %v675_v21, %v674_v20  ;;  %v686_v43 = vsel %vm606_vm1, %v2208_v14, 0.0  ;;  %v688_v57 = vsel %vm606_vm1, %v2215_v29, 0.0 }
  0x1d   : > { %v617_v40 = vadd.f32 %v616_v22, %v615_v3  ;;  %v654_v41 = vadd.f32 %v653_v26, %v652_v4  ;;  %v666_v42 = vrot.slane %v665_v27, 4  ;;  %v642_v49 = vrot.slane %v641_v34, 2 }
  0x1e   : > { %v630_v48 = vadd.f32 %v629_v33, %v628_v15  ;;  %v678_v50 = vadd.f32 %v677_v28, %v676_v35  ;;  %v687_v52 = vadd.f32 %v686_v43, %v685_v36  ;;  %v690_v6 = vsel %vm606_vm1, %v2222_v47, 0.0  ;;  %v2238_v15 = vld [vmem:[%s2086_s27 + $0xf8] sm:$0xff] }
  0x1f   : > { %v618_v53 = vrot.slane %v617_v40, 1  ;;  %v655_v54 = vrot.slane %v654_v41, 2  ;;  %v667_v55 = vadd.f32 %v666_v42, %v665_v27  ;;  %v643_v62 = vadd.f32 %v642_v49, %v641_v34 }
  0x20   : > { %v631_v60 = vrot.slane %v630_v48, 1  ;;  %v679_v63 = vrot.slane %v678_v50, 4  ;;  %v689_v0 = vadd.f32 %v688_v57, %v687_v52  ;;  %v698_v28 = vsel %vm606_vm1, %v2227_v58, 0.0 }
  0x21   : > { %v619_v1 = vadd.f32 %v618_v53, %v617_v40  ;;  %v656_v3 = vadd.f32 %v655_v54, %v654_v41  ;;  %v668_v4 = vrot.slane %v667_v55, 2  ;;  %v644_v20 = vrot.slane %v643_v62, 1 }
  0x22   : > { %v632_v19 = vadd.f32 %v631_v60, %v630_v48  ;;  %v680_v21 = vadd.f32 %v679_v63, %v678_v50  ;;  %v691_v22 = vadd.f32 %v690_v6, %v689_v0  ;;  %v699_v33 = vsel %vm606_vm1, %v2230_v59, 0.0 }
  0x23   : > { %v657_v26 = vrot.slane %v656_v3, 1  ;;  %v669_v27 = vadd.f32 %v668_v4, %v667_v55  ;;  %v645_v34 = vadd.f32 %v644_v20, %v643_v62  ;;  %v700_v40 = vadd.f32 %v699_v33, %v698_v28 }
  0x24   : > { %v681_v35 = vrot.slane %v680_v21, 2  ;;  %v692_v36 = vrot.slane %v691_v22, 4  ;;  %v701_v43 = vsel %vm606_vm1, %v2235_v13, 0.0  ;;  %v703_v48 = vsel %vm606_vm1, %v2238_v15, 0.0 }
  0x25   : > { %v658_v41 = vadd.f32 %v657_v26, %v656_v3  ;;  %v670_v42 = vrot.slane %v669_v27, 1  ;;  %v702_v52 = vadd.f32 %v701_v43, %v700_v40  ;;  %v750_v53 = vsel %vm749_vm2, %v632_v19, %v619_v1  ;;  %v794_v40 = vld [vmem:[%s2648_s7 + $0x8] sm:$0xff]  ;;  %v862_v43 = vld [vmem:[%s2650_s9 + $0x10] sm:$0xff] }
  0x26   : > { %v682_v49 = vadd.f32 %v681_v35, %v680_v21  ;;  %v693_v50 = vadd.f32 %v692_v36, %v691_v22  ;;  %v752_v60 = vsel %vm751_vm3, %v645_v34, %v750_v53  ;;  %v795_v36 = vld [vmem:[%s2648_s7 + $0x10] sm:$0xff] }
  0x27   : > { %v704_v57 = vadd.f32 %v703_v48, %v702_v52  ;;  %v671_v62 = vadd.f32 %v670_v42, %v669_v27  ;;  %v754_v3 = vsel %vm753_vm4, %v658_v41, %v752_v60  ;;  %v796_v27 = vld [vmem:[%s2648_s7 + $0x18] sm:$0xff]  ;;  %v793_v41 = vld [vmem:[%s2648_s7] sm:$0xff]  ;;  %v861_v48 = vld [vmem:[%s2650_s9 + $0x8] sm:$0xff] }
  0x28   : > { %v683_v54 = vrot.slane %v682_v49, 1  ;;  %v694_v55 = vrot.slane %v693_v50, 2  ;;  %816 = vmatpush.msra.mxu2 %v796_v27  ;;  %v863_v42 = vld [vmem:[%s2650_s9 + $0x18] sm:$0xff]  ;;  %v1929_v52 = vld [vmem:[%s2647_s6] ss:$0 sm:$0xff] }
  0x29   : > { %v705_v0 = vrot.slane %v704_v57, 4  ;;  %v756_v26 = vsel %vm755_vm5, %v671_v62, %v754_v3  ;;  %972 = vmatpush.msra.mxu0 %v863_v42  ;;  %1913 = vmatpush.msra.mxu1 %v863_v42  ;;  %v1227_v62 = vld [vmem:[%s2653_s12 + $0x10] sm:$0xff] }
  0x2a   : > { %v695_v63 = vadd.f32 %v694_v55, %v693_v50  ;;  %v684_v4 = vadd.f32 %v683_v54, %v682_v49  ;;  %817 = vmatpush.msra.mxu2 %v795_v36  ;;  %v860_v49 = vld [vmem:[%s2650_s9] sm:$0xff] }
  0x2b   : > { %v706_v20 = vadd.f32 %v705_v0, %v704_v57  ;;  %973 = vmatpush.msra.mxu0 %v862_v43  ;;  %1914 = vmatpush.msra.mxu1 %v862_v43  ;;  %v1225_v0 = vld [vmem:[%s2653_s12] sm:$0xff] }
  0x2c   : > { %v696_v6 = vrot.slane %v695_v63, 1  ;;  %v758_v1 = vsel %vm757_vm6, %v684_v4, %v756_v26  ;;  %818 = vmatpush.msra.mxu2 %v794_v40 }
  0x2d   : > { %v707_v21 = vrot.slane %v706_v20, 2  ;;  %974 = vmatpush.msra.mxu0 %v861_v48  ;;  %1915 = vmatpush.msra.mxu1 %v861_v48 }
  0x2e   : > { %v697_v22 = vadd.f32 %v696_v6, %v695_v63  ;;  %819 = vmatpush.msra.mxu2 %v793_v41  ;;  %v1226_v63 = vld [vmem:[%s2653_s12 + $0x8] sm:$0xff] }
  0x2f   : > { %v708_v28 = vadd.f32 %v707_v21, %v706_v20  ;;  %975 = vmatpush.msra.mxu0 %v860_v49  ;;  %1916 = vmatpush.msra.mxu1 %v860_v49  ;;  %v1931_v20 = vld [vmem:[%s2652_s11] ss:$0 sm:$0xff] }
  0x30   : > { %v760_v33 = vsel %vm759_vm7, %v697_v22, %v758_v1  ;;  %1844 = vmatmul.msk.f32.vlgmr.msra.gmra.mxu0 %vm606_vm1, %v2089_v7 }
  0x31   : > { %v709_v19 = vrot.slane %v708_v28, 1 }
  0x33   : > { %v710_v35 = vadd.f32 %v709_v19, %v708_v28 }
  0x35   : > { %v762_v34 = vsel %vm761_vm8, %v710_v35, %v760_v33 }
  0x36   : > { %1841 = vmatmul.msk.f32.vlgmr.msrb.gmra.mxu1 %vm606_vm1, %v762_v34 }
  0x38   : > { %1845 = vmatmul.msk.f32.gmra.mxu0 %vm606_vm1, %v2092_v8 }
  0x3e   : > { %1861 = vmatmul.msk.f32.vlgmr.msra.gmra.mxu1 %vm606_vm1, %v2164_v39 }
  0x40   : > { %1846 = vmatmul.msk.f32.gmra.mxu0 %vm606_vm1, %v2095_v9 }
  0x46   : > { %1862 = vmatmul.msk.f32.gmra.mxu1 %vm606_vm1, %v2171_v44 }
  0x48   : > { %1847 = vmatmul.msk.f32.gmra.mxu0 %vm606_vm1, %v2098_v10 }
  0x4e   : > { %1863 = vmatmul.msk.f32.gmra.mxu1 %vm606_vm1, %v2174_v45 }
  0x50   : > { %1848 = vmatmul.msk.f32.gmra.mxu0 %vm606_vm1, %v2101_v11  ;;  %v832_v11 = vld [vmem:[%s2651_s10 + $0x8] sm:$0xff] }
  0x51   : > { %854 = vmatpush.msrb.mxu2 %v832_v11 }
  0x56   : > { %1864 = vmatmul.msk.f32.gmra.mxu1 %vm606_vm1, %v2177_v46 }
  0x58   : > { %1849 = vmatmul.msk.f32.gmra.mxu0 %vm606_vm1, %v2104_v12  ;;  %v831_v12 = vld [vmem:[%s2651_s10] sm:$0xff] }
  0x59   : > { %855 = vmatpush.msrb.mxu2 %v831_v12 }
  0x5e   : > { %1865 = vmatmul.msk.f32.gmra.mxu1 %vm606_vm1, %v2184_v51 }
  0x60   : > { %1850 = vmatmul.msk.f32.gmra.mxu0 %vm606_vm1, %v2113_v16 }
  0x66   : > { %1866 = vmatmul.msk.f32.gmra.mxu1 %vm606_vm1, %v2191_v56 }
  0x68   : > { %1851 = vmatmul.msk.f32.gmra.mxu0 %vm606_vm1, %v2116_v17  ;;  %v1930_v17 = vld [vmem:[%s2649_s8] ss:$0 sm:$0xff] }
  0x6e   : > { %1867 = vmatmul.msk.f32.gmra.mxu1 %vm606_vm1, %v2196_v61 }
  0x70   : > { %1852 = vmatmul.msk.f32.gmra.mxu0 %vm606_vm1, %v2119_v18 }
  0x76   : > { %1868 = vmatmul.msk.f32.gmra.mxu1 %vm606_vm1, %v2203_v2 }
  0x78   : > { %1853 = vmatmul.msk.f32.gmra.mxu0 %vm606_vm1, %v2128_v23 }
  0x7e   : > { %1869 = vmatmul.msk.f32.gmra.mxu1 %vm606_vm1, %v2208_v14 }
  0x80   : > { %1854 = vmatmul.msk.f32.gmra.mxu0 %vm606_vm1, %v2131_v24 }
  0x86   : > { %1870 = vmatmul.msk.f32.gmra.mxu1 %vm606_vm1, %v2215_v29 }
  0x88   : > { %1855 = vmatmul.msk.f32.gmra.mxu0 %vm606_vm1, %v2134_v25 }
  0x8c   : > { %v738_v50 = vpop.f32.mrf.mxu1 }
  0x8e   : > { %1871 = vmatmul.msk.f32.gmra.mxu1 %vm606_vm1, %v2222_v47 }
  0x90   : > { %1856 = vmatmul.msk.f32.gmra.mxu0 %vm606_vm1, %v2143_v30 }
  0x96   : > { %1872 = vmatmul.msk.f32.gmra.mxu1 %vm606_vm1, %v2227_v58 }
  0x98   : > { %1857 = vmatmul.msk.f32.gmra.mxu0 %vm606_vm1, %v2146_v31  ;;  %v828_v31 = vld [vmem:[%s554_s17] sm:$0xff] }
  0x9e   : > { %1873 = vmatmul.msk.f32.gmra.mxu1 %vm606_vm1, %v2230_v59 }
  0xa0   : > { %1858 = vmatmul.msk.f32.gmra.mxu0 %vm606_vm1, %v2149_v32 }
  0xa6   : > { %1874 = vmatmul.msk.f32.gmra.mxu1 %vm606_vm1, %v2235_v13 }
  0xa8   : > { %1859 = vmatmul.msk.f32.gmra.mxu0 %vm606_vm1, %v2158_v37 }
  0xad   : > { %v977_v16 = vpop.f32.mrf.mxu0 }
  0xae   : > { %1875 = vmatmul.msk.f32.gmra.mxu1 %vm606_vm1, %v2238_v15  ;;  %v1228_v15 = vld [vmem:[%s2653_s12 + $0x18] sm:$0xff] }
  0xaf   : > { %1917 = vmatpush.msra.mxu3 %v1228_v15 }
  0xb0   : > { %1860 = vmatmul.msk.f32.gmra.mxu0 %vm606_vm1, %v2161_v38 }
  0xb1   : > { %1918 = vmatpush.msra.mxu3 %v1227_v62 }
  0xb3   : > { %v782_v53 = vpop.f32.mrf.mxu1  ;;  %1919 = vmatpush.msra.mxu3 %v1226_v63 }
  0xb4   : > { %v783_v54 = vadd.f32 %v782_v53, %v738_v50 }
  0xb5   : > { %v980_v18 = vpop.f32.mrf.mxu0  ;;  %1920 = vmatpush.msra.mxu3 %v1225_v0 }
  0xb6   : > { %v789_v55 = vadd.f32 %v1929_v52, %v783_v54 }
  0xb8   : > { %vm790_vm9 = vcmp.gt.f32.partialorder %v789_v55, 0.0  ;;  %v791_v57 = vmul.f32 0.01, %v789_v55 }
  0xba   : > { %v792_v60 = vsel %vm790_vm9, %v789_v55, %v791_v57 }
  0xbb   : > { %1842 = vmatmul.msk.f32.vlgmr.msra.gmra.mxu2 %vm606_vm1, %v792_v60  ;;  %v1028_v4 = vpop.f32.mrf.mxu1 }
  0xbc   : > { %1337 = vmatpush.msra.mxu2 %v1228_v15 }
  0xbd   : > { %v983_v51 = vpop.f32.mrf.mxu0 }
  0xbe   : > { %1338 = vmatpush.msra.mxu2 %v1227_v62 }
  0xc0   : > { %1339 = vmatpush.msra.mxu2 %v1226_v63 }
  0xc2   : > { %1340 = vmatpush.msra.mxu2 %v1225_v0 }
  0xc3   : > { %v1031_v26 = vpop.f32.mrf.mxu1 }
  0xc5   : > { %v2362_v56 = vpop.f32.mrf.mxu0 }
  0xcb   : > { %v1034_v41 = vpop.f32.mrf.mxu1 }
  0xcd   : > { %v2364_v61 = vpop.f32.mrf.mxu0 }
  0xd3   : > { %v1037_v60 = vpop.f32.mrf.mxu1 }
  0xd5   : > { %v2366_v2 = vpop.f32.mrf.mxu0 }
 0x13e   : > { %v821_v23 = vpop.f32.mrf.mxu2 }
 0x13f   : > { %v822_v24 = vadd.f32 %v1930_v17, %v821_v23 }
 0x141   : > { %v824_v25 = vadd.f32 %v822_v24, %v2073_v5  ;;  %v2368_v5 = vpop.f32.mrf.mxu0 }
 0x143   : > { %v826_v30 = vmul.f32 0.01, %v824_v25  ;;  %vm825_vm10 = vcmp.gt.f32.partialorder %v824_v25, 0.0 }
 0x145   : > { %v827_v32 = vsel %vm825_vm10, %v824_v25, %v826_v30 }
 0x146   : > { %v829_v46 = vadd.f32 %v828_v31, %v827_v32  ;;  %1843 = vmatmul.msk.f32.vlgmr.msrb.gmra.mxu2 %vm717_vm0, %v827_v32  ;;  %v1040_v31 = vpop.f32.mrf.mxu1 }
 0x148   : > { %830 = vst.msk [vmem:[%s565_s19] sm:$0xff] %vm717_vm0, %v829_v46 }
 0x149   : > { %v2370_v14 = vpop.f32.mrf.mxu0 }
 0x151   : > { %v2372_v29 = vpop.f32.mrf.mxu0 }
 0x159   : > { %v2374_v47 = vpop.f32.mrf.mxu0 }
 0x161   : > { %v2376_v58 = vpop.f32.mrf.mxu0 }
 0x169   : > { %v2378_v59 = vpop.f32.mrf.mxu0 }
 0x171   : > { %v2380_v13 = vpop.f32.mrf.mxu0 }
 0x179   : > { %v2394_v3 = vpop.f32.mrf.mxu0 }
 0x181   : > { %v2396_v6 = vpop.f32.mrf.mxu0 }
 0x189   : > { %v1022_v21 = vpop.f32.mrf.mxu0 }
 0x191   : > { %v1025_v42 = vpop.f32.mrf.mxu0 }
 0x1c9   : > { %v857_v22 = vpop.f32.mrf.mxu2 }
 0x1ca   : > { %v2401_v28 = vadd.f32 %v1931_v20, %v857_v22  ;;  %v1043_v20 = vpop.f32.mrf.mxu1 }
 0x1cc   : > { %v1081_v1 = vperm.slane %v2401_v28, 0  ;;  %v1076_v19 = vrot.slane %v2401_v28, 3  ;;  %v1077_v33 = vrot.slane %v2401_v28, 4  ;;  %v1074_v24 = vrot.slane %v2401_v28, 1 }
 0x1cd   : > { %v1078_v0 = vrot.slane %v2401_v28, 5 }
 0x1ce   : > { %v1097_v35 = vadd.f32 %v1081_v1, %v977_v16  ;;  %v2406_v34 = vperm.slane %v1076_v19, 0  ;;  %v1085_v36 = vperm.slane %v1077_v33, 0  ;;  %v1098_v48 = vadd.f32 %v1081_v1, %v980_v18 }
 0x1cf   : > { %v1099_v57 = vadd.f32 %v1081_v1, %v983_v51  ;;  %v1100_v23 = vadd.f32 %v1081_v1, %v2362_v56  ;;  %v1082_v46 = vperm.slane %v1074_v24, 0 }
 0x1d0   : > { %vm1129_vm11 = vcmp.gt.f32.partialorder %v1097_v35, 0.0  ;;  %v1161_v27 = vmul.f32 0.01, %v1097_v35  ;;  %v1112_v40 = vadd.f32 %v2406_v34, %v1022_v21  ;;  %v1113_v50 = vadd.f32 %v1085_v36, %v1025_v42 }
 0x1d1   : > { %v1162_v53 = vmul.f32 0.01, %v1098_v48  ;;  %vm1130_vm13 = vcmp.gt.f32.partialorder %v1098_v48, 0.0  ;;  %v1114_v12 = vadd.f32 %v1085_v36, %v1028_v4  ;;  %v1163_v16 = vmul.f32 0.01, %v1099_v57 }
 0x1d2   : > { %v1193_v43 = vsel %vm1129_vm11, %v1097_v35, %v1161_v27  ;;  %vm1144_vm12 = vcmp.gt.f32.partialorder %v1112_v40, 0.0  ;;  %v1176_v49 = vmul.f32 0.01, %v1112_v40  ;;  %v1177_v54 = vmul.f32 0.01, %v1113_v50  ;;  %v1046_v27 = vpop.f32.mrf.mxu1 }
 0x1d3   : > { %1876 = vmatmul.msk.f32.vlgmr.msra.gmra.mxu2 %vm606_vm1, %v1193_v43  ;;  %v1194_v55 = vsel %vm1130_vm13, %v1098_v48, %v1162_v53  ;;  %vm1145_vm14 = vcmp.gt.f32.partialorder %v1113_v50, 0.0  ;;  %vm1131_vm15 = vcmp.gt.f32.partialorder %v1099_v57, 0.0  ;;  %v1178_v17 = vmul.f32 0.01, %v1114_v12 }
 0x1d4   : > { %v1208_v52 = vsel %vm1144_vm12, %v1112_v40, %v1176_v49  ;;  %v1209_v11 = vsel %vm1145_vm14, %v1113_v50, %v1177_v54  ;;  %v1195_v18 = vsel %vm1131_vm15, %v1099_v57, %v1163_v16  ;;  %vm1146_vm0 = vcmp.gt.f32.partialorder %v1114_v12, 0.0 }
 0x1d5   : > { %1891 = vmatmul.msk.f32.vlgmr.msra.gmra.mxu3 %vm606_vm1, %v1208_v52  ;;  %v1210_v25 = vsel %vm1146_vm0, %v1114_v12, %v1178_v17  ;;  %v1115_v30 = vadd.f32 %v1085_v36, %v1031_v26  ;;  %v1164_v32 = vmul.f32 0.01, %v1100_v23  ;;  %vm1132_vm2 = vcmp.gt.f32.partialorder %v1100_v23, 0.0 }
 0x1d6   : > { %v1101_v62 = vadd.f32 %v1082_v46, %v2364_v61  ;;  %v1116_v63 = vadd.f32 %v1085_v36, %v1034_v41  ;;  %v1086_v21 = vperm.slane %v1078_v0, 0  ;;  %v1102_v1 = vadd.f32 %v1082_v46, %v2366_v2 }
 0x1d7   : > { %v1179_v51 = vmul.f32 0.01, %v1115_v30  ;;  %v1196_v15 = vsel %vm1132_vm2, %v1100_v23, %v1164_v32  ;;  %vm1147_vm3 = vcmp.gt.f32.partialorder %v1115_v30, 0.0  ;;  %v1103_v40 = vadd.f32 %v1082_v46, %v2368_v5 }
 0x1d8   : > { %v1165_v4 = vmul.f32 0.01, %v1101_v62  ;;  %vm1133_vm4 = vcmp.gt.f32.partialorder %v1101_v62, 0.0  ;;  %v1180_v26 = vmul.f32 0.01, %v1116_v63  ;;  %vm1148_vm5 = vcmp.gt.f32.partialorder %v1116_v63, 0.0 }
 0x1d9   : > { %v1211_v56 = vsel %vm1147_vm3, %v1115_v30, %v1179_v51  ;;  %v1117_v19 = vadd.f32 %v1086_v21, %v1037_v60  ;;  %v1166_v33 = vmul.f32 0.01, %v1102_v1  ;;  %vm1134_vm6 = vcmp.gt.f32.partialorder %v1102_v1, 0.0 }
 0x1da   : > { %v1197_v22 = vsel %vm1133_vm4, %v1101_v62, %v1165_v4  ;;  %v1212_v61 = vsel %vm1148_vm5, %v1116_v63, %v1180_v26  ;;  %v1118_v42 = vadd.f32 %v1086_v21, %v1040_v31  ;;  %v1167_v2 = vmul.f32 0.01, %v1103_v40  ;;  %v1049_v52 = vpop.f32.mrf.mxu1 }
 0x1db   : > { %1877 = vmatmul.msk.f32.gmra.mxu2 %vm606_vm1, %v1194_v55  ;;  %v1181_v35 = vmul.f32 0.01, %v1117_v19  ;;  %v1198_v36 = vsel %vm1134_vm6, %v1102_v1, %v1166_v33  ;;  %vm1149_vm7 = vcmp.gt.f32.partialorder %v1117_v19, 0.0  ;;  %vm1135_vm8 = vcmp.gt.f32.partialorder %v1103_v40, 0.0 }
 0x1dc   : > { %v1182_v43 = vmul.f32 0.01, %v1118_v42  ;;  %v1199_v48 = vsel %vm1135_vm8, %v1103_v40, %v1167_v2  ;;  %vm1150_vm9 = vcmp.gt.f32.partialorder %v1118_v42, 0.0  ;;  %v1104_v49 = vadd.f32 %v1082_v46, %v2370_v14 }
 0x1dd   : > { %1892 = vmatmul.msk.f32.gmra.mxu3 %vm606_vm1, %v1209_v11  ;;  %v1213_v41 = vsel %vm1149_vm7, %v1117_v19, %v1181_v35  ;;  %v1075_v50 = vrot.slane %v2401_v28, 2  ;;  %v1119_v5 = vadd.f32 %v1086_v21, %v1043_v20  ;;  %v1120_v12 = vadd.f32 %v1086_v21, %v1046_v27 }
 0x1de   : > { %v1214_v53 = vsel %vm1150_vm9, %v1118_v42, %v1182_v43  ;;  %v1168_v54 = vmul.f32 0.01, %v1104_v49  ;;  %vm1136_vm10 = vcmp.gt.f32.partialorder %v1104_v49, 0.0  ;;  %v1079_v16 = vrot.slane %v2401_v28, 6 }
 0x1df   : > { %v1083_v55 = vperm.slane %v1075_v50, 0  ;;  %v1183_v57 = vmul.f32 0.01, %v1119_v5  ;;  %vm1151_vm11 = vcmp.gt.f32.partialorder %v1119_v5, 0.0  ;;  %v1184_v23 = vmul.f32 0.01, %v1120_v12 }
 0x1e0   : > { %v1200_v60 = vsel %vm1136_vm10, %v1104_v49, %v1168_v54  ;;  %v1087_v24 = vperm.slane %v1079_v16, 0  ;;  %vm1152_vm13 = vcmp.gt.f32.partialorder %v1120_v12, 0.0  ;;  %v1109_v19 = vadd.f32 %v2406_v34, %v2380_v13 }
 0x1e1   : > { %v1105_v11 = vadd.f32 %v1083_v55, %v2372_v29  ;;  %v1215_v14 = vsel %vm1151_vm11, %v1119_v5, %v1183_v57  ;;  %v1106_v30 = vadd.f32 %v1083_v55, %v2374_v47  ;;  %v1216_v29 = vsel %vm1152_vm13, %v1120_v12, %v1184_v23 }
 0x1e2   : > { %v1052_v17 = vpop.f32.mrf.mxu1  ;;  %v1121_v31 = vadd.f32 %v1087_v24, %v1049_v52  ;;  %v1107_v62 = vadd.f32 %v1083_v55, %v2376_v58  ;;  %v1108_v26 = vadd.f32 %v1083_v55, %v2378_v59  ;;  %v1080_v35 = vrot.slane %v2401_v28, 7 }
 0x1e3   : > { %1878 = vmatmul.msk.f32.gmra.mxu2 %vm606_vm1, %v1195_v18  ;;  %v1169_v18 = vmul.f32 0.01, %v1105_v11  ;;  %vm1137_vm12 = vcmp.gt.f32.partialorder %v1105_v11, 0.0  ;;  %v1170_v32 = vmul.f32 0.01, %v1106_v30  ;;  %vm1138_vm14 = vcmp.gt.f32.partialorder %v1106_v30, 0.0 }
 0x1e4   : > { %v1185_v51 = vmul.f32 0.01, %v1121_v31  ;;  %vm1153_vm15 = vcmp.gt.f32.partialorder %v1121_v31, 0.0  ;;  %v1122_v63 = vadd.f32 %v1087_v24, %v1052_v17  ;;  %v1171_v47 = vmul.f32 0.01, %v1107_v62 }
 0x1e5   : > { %1893 = vmatmul.msk.f32.gmra.mxu3 %vm606_vm1, %v1210_v25  ;;  %v1201_v25 = vsel %vm1137_vm12, %v1105_v11, %v1169_v18  ;;  %vm1139_vm0 = vcmp.gt.f32.partialorder %v1107_v62, 0.0  ;;  %v1172_v58 = vmul.f32 0.01, %v1108_v26  ;;  %vm1140_vm3 = vcmp.gt.f32.partialorder %v1108_v26, 0.0  ;;  %v2463_v17 = vld [vmem:[%s2654_s13] ss:$0 sm:$0xff] }
 0x1e6   : > { %v1186_v0 = vmul.f32 0.01, %v1122_v63  ;;  %v1203_v20 = vsel %vm1139_vm0, %v1107_v62, %v1171_v47  ;;  %vm1154_vm2 = vcmp.gt.f32.partialorder %v1122_v63, 0.0  ;;  %vm1141_vm5 = vcmp.gt.f32.partialorder %v1109_v19, 0.0  ;;  %v1617_v62 = vld [vmem:[%s2471_s25 + $0x78] sm:$0xff] }
 0x1e7   : > { %v1088_v40 = vperm.slane %v1080_v35, 0  ;;  %v1110_v2 = vadd.f32 %v2406_v34, %v2394_v3  ;;  %v1111_v52 = vadd.f32 %v2406_v34, %v2396_v6 }
 0x1e8   : > { %v1218_v21 = vsel %vm1154_vm2, %v1122_v63, %v1186_v0 }
 0x1e9   : > { %v1174_v28 = vmul.f32 0.01, %v1110_v2  ;;  %vm1142_vm7 = vcmp.gt.f32.partialorder %v1110_v2, 0.0  ;;  %v1175_v3 = vmul.f32 0.01, %v1111_v52  ;;  %vm1143_vm9 = vcmp.gt.f32.partialorder %v1111_v52, 0.0 }
 0x1ea   : > { %v1055_v46 = vpop.f32.mrf.mxu1 }
 0x1eb   : > { %1879 = vmatmul.msk.f32.gmra.mxu2 %vm606_vm1, %v1196_v15  ;;  %v1202_v15 = vsel %vm1138_vm14, %v1106_v30, %v1170_v32  ;;  %v1206_v50 = vsel %vm1142_vm7, %v1110_v2, %v1174_v28  ;;  %v1207_v57 = vsel %vm1143_vm9, %v1111_v52, %v1175_v3  ;;  %v1602_v32 = vld [vmem:[%s2471_s25] sm:$0xff]  ;;  %v1605_v3 = vld [vmem:[%s2471_s25 + $0x18] sm:$0xff] }
 0x1ed   : > { %1894 = vmatmul.msk.f32.gmra.mxu3 %vm606_vm1, %v1211_v56  ;;  %v1217_v56 = vsel %vm1153_vm15, %v1121_v31, %v1185_v51 }
 0x1f2   : > { %v1058_v4 = vpop.f32.mrf.mxu1 }
 0x1f3   : > { %1880 = vmatmul.msk.f32.gmra.mxu2 %vm606_vm1, %v1197_v22  ;;  %v1123_v22 = vadd.f32 %v1087_v24, %v1055_v46  ;;  %v1124_v27 = vadd.f32 %v1087_v24, %v1058_v4 }
 0x1f5   : > { %1895 = vmatmul.msk.f32.gmra.mxu3 %vm606_vm1, %v1212_v61  ;;  %v1187_v1 = vmul.f32 0.01, %v1123_v22  ;;  %v1204_v61 = vsel %vm1140_vm3, %v1108_v26, %v1172_v58  ;;  %vm1155_vm4 = vcmp.gt.f32.partialorder %v1123_v22, 0.0  ;;  %vm1156_vm6 = vcmp.gt.f32.partialorder %v1124_v27, 0.0 }
 0x1f7   : > { %v1219_v59 = vsel %vm1155_vm4, %v1123_v22, %v1187_v1 }
 0x1fa   : > { %v1061_v33 = vpop.f32.mrf.mxu1 }
 0x1fb   : > { %1881 = vmatmul.msk.f32.gmra.mxu2 %vm606_vm1, %v1198_v36  ;;  %v1173_v36 = vmul.f32 0.01, %v1109_v19  ;;  %v1125_v43 = vadd.f32 %v1088_v40, %v1061_v33 }
 0x1fd   : > { %1896 = vmatmul.msk.f32.gmra.mxu3 %vm606_vm1, %v1213_v41  ;;  %v1188_v41 = vmul.f32 0.01, %v1124_v27  ;;  %v1205_v42 = vsel %vm1141_vm5, %v1109_v19, %v1173_v36  ;;  %v1189_v49 = vmul.f32 0.01, %v1125_v43  ;;  %vm1157_vm8 = vcmp.gt.f32.partialorder %v1125_v43, 0.0  ;;  %v1618_v19 = vld [vmem:[%s2471_s25 + $0x80] sm:$0xff] }
 0x1ff   : > { %v1220_v13 = vsel %vm1156_vm6, %v1124_v27, %v1188_v41  ;;  %v1604_v41 = vld [vmem:[%s2471_s25 + $0x10] sm:$0xff] }
 0x203   : > { %1882 = vmatmul.msk.f32.gmra.mxu2 %vm606_vm1, %v1199_v48  ;;  %v1064_v48 = vpop.f32.mrf.mxu1 }
 0x204   : > { %v1126_v5 = vadd.f32 %v1088_v40, %v1064_v48  ;;  %v1619_v48 = vld [vmem:[%s2471_s25 + $0x88] sm:$0xff] }
 0x205   : > { %1897 = vmatmul.msk.f32.gmra.mxu3 %vm606_vm1, %v1214_v53  ;;  %v1221_v53 = vsel %vm1157_vm8, %v1125_v43, %v1189_v49 }
 0x206   : > { %v1190_v55 = vmul.f32 0.01, %v1126_v5  ;;  %vm1158_vm10 = vcmp.gt.f32.partialorder %v1126_v5, 0.0 }
 0x20b   : > { %1883 = vmatmul.msk.f32.gmra.mxu2 %vm606_vm1, %v1200_v60  ;;  %v1067_v54 = vpop.f32.mrf.mxu1  ;;  %v1222_v60 = vsel %vm1158_vm10, %v1126_v5, %v1190_v55 }
 0x20c   : > { %v1127_v11 = vadd.f32 %v1088_v40, %v1067_v54 }
 0x20d   : > { %1898 = vmatmul.msk.f32.gmra.mxu3 %vm606_vm1, %v1215_v14 }
 0x20e   : > { %v1191_v6 = vmul.f32 0.01, %v1127_v11  ;;  %vm1159_vm11 = vcmp.gt.f32.partialorder %v1127_v11, 0.0 }
 0x210   : > { %v1223_v12 = vsel %vm1159_vm11, %v1127_v11, %v1191_v6  ;;  %v1620_v11 = vld [vmem:[%s2471_s25 + $0x90] sm:$0xff] }
 0x213   : > { %1884 = vmatmul.msk.f32.gmra.mxu2 %vm606_vm1, %v1201_v25  ;;  %v1070_v34 = vpop.f32.mrf.mxu1 }
 0x214   : > { %v1128_v14 = vadd.f32 %v1088_v40, %v1070_v34 }
 0x215   : > { %1899 = vmatmul.msk.f32.gmra.mxu3 %vm606_vm1, %v1216_v29 }
 0x216   : > { %v1192_v16 = vmul.f32 0.01, %v1128_v14  ;;  %vm1160_vm12 = vcmp.gt.f32.partialorder %v1128_v14, 0.0 }
 0x218   : > { %v1224_v18 = vsel %vm1160_vm12, %v1128_v14, %v1192_v16 }
 0x21b   : > { %1885 = vmatmul.msk.f32.gmra.mxu2 %vm606_vm1, %v1202_v15 }
 0x21d   : > { %1900 = vmatmul.msk.f32.gmra.mxu3 %vm606_vm1, %v1217_v56 }
 0x223   : > { %1886 = vmatmul.msk.f32.gmra.mxu2 %vm606_vm1, %v1203_v20 }
 0x225   : > { %1901 = vmatmul.msk.f32.gmra.mxu3 %vm606_vm1, %v1218_v21  ;;  %v1603_v21 = vld [vmem:[%s2471_s25 + $0x8] sm:$0xff] }
 0x22b   : > { %1887 = vmatmul.msk.f32.gmra.mxu2 %vm606_vm1, %v1204_v61 }
 0x22d   : > { %1902 = vmatmul.msk.f32.gmra.mxu3 %vm606_vm1, %v1219_v59 }
 0x233   : > { %1888 = vmatmul.msk.f32.gmra.mxu2 %vm606_vm1, %v1205_v42 }
 0x235   : > { %1903 = vmatmul.msk.f32.gmra.mxu3 %vm606_vm1, %v1220_v13 }
 0x23b   : > { %1889 = vmatmul.msk.f32.gmra.mxu2 %vm606_vm1, %v1206_v50 }
 0x23d   : > { %1904 = vmatmul.msk.f32.gmra.mxu3 %vm606_vm1, %v1221_v53 }
 0x243   : > { %1890 = vmatmul.msk.f32.gmra.mxu2 %vm606_vm1, %v1207_v57 }
 0x245   : > { %1905 = vmatmul.msk.f32.gmra.mxu3 %vm606_vm1, %v1222_v60 }
 0x24d   : > { %1906 = vmatmul.msk.f32.gmra.mxu3 %vm606_vm1, %v1223_v12  ;;  %v1933_v12 = vld [vmem:[%s2086_s27 + $0x20] sm:$0xff] }
 0x255   : > { %1907 = vmatmul.msk.f32.gmra.mxu3 %vm606_vm1, %v1224_v18 }
 0x256   : > { %v1342_v23 = vpop.f32.mrf.mxu2 }
 0x257   : > { %v1442_v24 = vadd.f32 %v2463_v17, %v1342_v23 }
 0x258   : > { %v1387_v30 = vpop.f32.mrf.mxu3 }
 0x259   : > { %v1474_v25 = vadd.f32 %v1442_v24, %v2089_v7  ;;  %v1457_v29 = vadd.f32 %v2463_v17, %v1387_v30  ;;  %v1606_v24 = vld [vmem:[%s2471_s25 + $0x20] sm:$0xff] }
 0x25b   : > { %vm1506_vm13 = vcmp.gt.f32.partialorder %v1474_v25, 0.0  ;;  %v1538_v31 = vmul.f32 0.01, %v1474_v25  ;;  %v1489_v46 = vadd.f32 %v1457_v29, %v2158_v37 }
 0x25d   : > { %v1570_v51 = vsel %vm1506_vm13, %v1474_v25, %v1538_v31  ;;  %vm1521_vm14 = vcmp.gt.f32.partialorder %v1489_v46, 0.0  ;;  %v1553_v7 = vmul.f32 0.01, %v1489_v46 }
 0x25e   : > { %v1634_v15 = vadd.f32 %v1602_v32, %v1570_v51  ;;  %v1345_v56 = vpop.f32.mrf.mxu2  ;;  %v1621_v32 = vld [vmem:[%s2471_s25 + $0x98] sm:$0xff] }
 0x25f   : > { %v1443_v63 = vadd.f32 %v2463_v17, %v1345_v56  ;;  %v1585_v37 = vsel %vm1521_vm14, %v1489_v46, %v1553_v7 }
 0x260   : > { %1666 = vst.msk [vmem:[%s2481_s28] sm:$0xff] %vm606_vm1, %v1634_v15  ;;  %v1649_v47 = vadd.f32 %v1617_v62, %v1585_v37  ;;  %v1390_v4 = vpop.f32.mrf.mxu3  ;;  %v1934_v62 = vld [vmem:[%s2086_s27 + $0x28] sm:$0xff] }
 0x261   : > { %v1475_v0 = vadd.f32 %v1443_v63, %v2092_v8  ;;  %v1458_v20 = vadd.f32 %v2463_v17, %v1390_v4 }
 0x262   : > { %1681 = vst.msk [vmem:[%s2481_s28 + $0x78] sm:$0xff] %vm606_vm1, %v1649_v47  ;;  %v1607_v47 = vld [vmem:[%s2471_s25 + $0x28] sm:$0xff] }
 0x263   : > { %vm1507_vm15 = vcmp.gt.f32.partialorder %v1475_v0, 0.0  ;;  %v1539_v26 = vmul.f32 0.01, %v1475_v0  ;;  %v1490_v22 = vadd.f32 %v1458_v20, %v2161_v38 }
 0x265   : > { %v1571_v58 = vsel %vm1507_vm15, %v1475_v0, %v1539_v26  ;;  %vm1522_vm0 = vcmp.gt.f32.partialorder %v1490_v22, 0.0  ;;  %v1554_v61 = vmul.f32 0.01, %v1490_v22  ;;  %v1935_v0 = vld [vmem:[%s2086_s27 + $0xa0] sm:$0xff] }
 0x266   : > { %v1635_v1 = vadd.f32 %v1603_v21, %v1571_v58  ;;  %v1348_v33 = vpop.f32.mrf.mxu2 }
 0x267   : > { %v1444_v8 = vadd.f32 %v2463_v17, %v1348_v33  ;;  %v1586_v35 = vsel %vm1522_vm0, %v1490_v22, %v1554_v61  ;;  %v1622_v22 = vld [vmem:[%s2471_s25 + $0xa0] sm:$0xff]  ;;  %v1936_v33 = vld [vmem:[%s2086_s27 + $0x30] sm:$0xff] }
 0x268   : > { %1667 = vst.msk [vmem:[%s2481_s28 + $0x8] sm:$0xff] %vm606_vm1, %v1635_v1  ;;  %v1650_v59 = vadd.f32 %v1618_v19, %v1586_v35  ;;  %v1393_v36 = vpop.f32.mrf.mxu3 }
 0x269   : > { %v1476_v27 = vadd.f32 %v1444_v8, %v2095_v9  ;;  %v1459_v38 = vadd.f32 %v2463_v17, %v1393_v36  ;;  %v1608_v36 = vld [vmem:[%s2471_s25 + $0x30] sm:$0xff] }
 0x26a   : > { %1682 = vst.msk [vmem:[%s2481_s28 + $0x80] sm:$0xff] %vm606_vm1, %v1650_v59 }
 0x26b   : > { %vm1508_vm2 = vcmp.gt.f32.partialorder %v1476_v27, 0.0  ;;  %v1540_v40 = vmul.f32 0.01, %v1476_v27  ;;  %v1491_v42 = vadd.f32 %v1459_v38, %v2164_v39  ;;  %v1937_v38 = vld [vmem:[%s2086_s27 + $0xa8] sm:$0xff] }
 0x26d   : > { %v1572_v2 = vsel %vm1508_vm2, %v1476_v27, %v1540_v40  ;;  %vm1523_vm3 = vcmp.gt.f32.partialorder %v1491_v42, 0.0  ;;  %v1555_v43 = vmul.f32 0.01, %v1491_v42 }
 0x26e   : > { %v1636_v13 = vadd.f32 %v1604_v41, %v1572_v2  ;;  %v1351_v28 = vpop.f32.mrf.mxu2 }
 0x26f   : > { %v1445_v9 = vadd.f32 %v2463_v17, %v1351_v28  ;;  %v1587_v49 = vsel %vm1523_vm3, %v1491_v42, %v1555_v43 }
 0x270   : > { %1668 = vst.msk [vmem:[%s2481_s28 + $0x10] sm:$0xff] %vm606_vm1, %v1636_v13  ;;  %v1651_v50 = vadd.f32 %v1619_v48, %v1587_v49  ;;  %v1396_v53 = vpop.f32.mrf.mxu3  ;;  %v1623_v13 = vld [vmem:[%s2471_s25 + $0xa8] sm:$0xff]  ;;  %v1938_v49 = vld [vmem:[%s2086_s27 + $0x38] sm:$0xff] }
 0x271   : > { %v1477_v52 = vadd.f32 %v1445_v9, %v2098_v10  ;;  %v1460_v39 = vadd.f32 %v2463_v17, %v1396_v53 }
 0x272   : > { %1683 = vst.msk [vmem:[%s2481_s28 + $0x88] sm:$0xff] %vm606_vm1, %v1651_v50 }
 0x273   : > { %vm1509_vm4 = vcmp.gt.f32.partialorder %v1477_v52, 0.0  ;;  %v1541_v5 = vmul.f32 0.01, %v1477_v52  ;;  %v1492_v54 = vadd.f32 %v1460_v39, %v2171_v44 }
 0x275   : > { %v1573_v55 = vsel %vm1509_vm4, %v1477_v52, %v1541_v5  ;;  %vm1524_vm5 = vcmp.gt.f32.partialorder %v1492_v54, 0.0  ;;  %v1556_v60 = vmul.f32 0.01, %v1492_v54  ;;  %v1609_v5 = vld [vmem:[%s2471_s25 + $0x38] sm:$0xff] }
 0x276   : > { %v1637_v57 = vadd.f32 %v1605_v3, %v1573_v55  ;;  %v1354_v6 = vpop.f32.mrf.mxu2  ;;  %v1939_v3 = vld [vmem:[%s2086_s27 + $0xb0] sm:$0xff] }
 0x277   : > { %v1446_v10 = vadd.f32 %v2463_v17, %v1354_v6  ;;  %v1588_v34 = vsel %vm1524_vm5, %v1492_v54, %v1556_v60 }
 0x278   : > { %1669 = vst.msk [vmem:[%s2481_s28 + $0x18] sm:$0xff] %vm606_vm1, %v1637_v57  ;;  %v1652_v14 = vadd.f32 %v1620_v11, %v1588_v34  ;;  %v1399_v18 = vpop.f32.mrf.mxu3  ;;  %v1624_v11 = vld [vmem:[%s2471_s25 + $0xb0] sm:$0xff] }
 0x279   : > { %v1478_v16 = vadd.f32 %v1933_v12, %v1446_v10  ;;  %v1461_v44 = vadd.f32 %v2463_v17, %v1399_v18  ;;  %v1940_v12 = vld [vmem:[%s2086_s27 + $0x40] sm:$0xff] }
 0x27a   : > { %1684 = vst.msk [vmem:[%s2481_s28 + $0x90] sm:$0xff] %vm606_vm1, %v1652_v14 }
 0x27b   : > { %vm1510_vm6 = vcmp.gt.f32.partialorder %v1478_v16, 0.0  ;;  %v1542_v23 = vmul.f32 0.01, %v1478_v16  ;;  %v1493_v25 = vadd.f32 %v1461_v44, %v2174_v45 }
 0x27d   : > { %v1574_v30 = vsel %vm1510_vm6, %v1478_v16, %v1542_v23  ;;  %vm1525_vm7 = vcmp.gt.f32.partialorder %v1493_v25, 0.0  ;;  %v1557_v31 = vmul.f32 0.01, %v1493_v25 }
 0x27e   : > { %v1638_v29 = vadd.f32 %v1606_v24, %v1574_v30  ;;  %v1357_v46 = vpop.f32.mrf.mxu2  ;;  %v1610_v24 = vld [vmem:[%s2471_s25 + $0x40] sm:$0xff] }
 0x27f   : > { %v1447_v51 = vadd.f32 %v2463_v17, %v1357_v46  ;;  %v1589_v15 = vsel %vm1525_vm7, %v1493_v25, %v1557_v31  ;;  %v1941_v25 = vld [vmem:[%s2086_s27 + $0xb8] sm:$0xff] }
 0x280   : > { %1670 = vst.msk [vmem:[%s2481_s28 + $0x20] sm:$0xff] %vm606_vm1, %v1638_v29  ;;  %v1653_v7 = vadd.f32 %v1621_v32, %v1589_v15  ;;  %v1402_v63 = vpop.f32.mrf.mxu3  ;;  %v1625_v46 = vld [vmem:[%s2471_s25 + $0xb8] sm:$0xff] }
 0x281   : > { %v1479_v56 = vadd.f32 %v1934_v62, %v1447_v51  ;;  %v1462_v45 = vadd.f32 %v2463_v17, %v1402_v63 }
 0x282   : > { %1685 = vst.msk [vmem:[%s2481_s28 + $0x98] sm:$0xff] %vm606_vm1, %v1653_v7 }
 0x283   : > { %vm1511_vm8 = vcmp.gt.f32.partialorder %v1479_v56, 0.0  ;;  %v1543_v37 = vmul.f32 0.01, %v1479_v56  ;;  %v1494_v4 = vadd.f32 %v1935_v0, %v1462_v45  ;;  %v1611_v0 = vld [vmem:[%s2471_s25 + $0x48] sm:$0xff] }
 0x285   : > { %v1575_v20 = vsel %vm1511_vm8, %v1479_v56, %v1543_v37  ;;  %vm1526_vm9 = vcmp.gt.f32.partialorder %v1494_v4, 0.0  ;;  %v1558_v21 = vmul.f32 0.01, %v1494_v4  ;;  %v1942_v56 = vld [vmem:[%s2086_s27 + $0x48] sm:$0xff] }
 0x286   : > { %v1639_v26 = vadd.f32 %v1607_v47, %v1575_v20  ;;  %v1360_v58 = vpop.f32.mrf.mxu2 }
 0x287   : > { %v1448_v1 = vadd.f32 %v2463_v17, %v1360_v58  ;;  %v1590_v61 = vsel %vm1526_vm9, %v1494_v4, %v1558_v21  ;;  %v1943_v4 = vld [vmem:[%s2086_s27 + $0xc0] sm:$0xff] }
 0x288   : > { %1671 = vst.msk [vmem:[%s2481_s28 + $0x28] sm:$0xff] %vm606_vm1, %v1639_v26  ;;  %v1654_v19 = vadd.f32 %v1622_v22, %v1590_v61  ;;  %v1405_v35 = vpop.f32.mrf.mxu3  ;;  %v1626_v58 = vld [vmem:[%s2471_s25 + $0xc0] sm:$0xff] }
 0x289   : > { %v1480_v8 = vadd.f32 %v1936_v33, %v1448_v1  ;;  %v1463_v59 = vadd.f32 %v2463_v17, %v1405_v35 }
 0x28a   : > { %1686 = vst.msk [vmem:[%s2481_s28 + $0xa0] sm:$0xff] %vm606_vm1, %v1654_v19 }
 0x28b   : > { %vm1512_vm10 = vcmp.gt.f32.partialorder %v1480_v8, 0.0  ;;  %v1544_v27 = vmul.f32 0.01, %v1480_v8  ;;  %v1495_v40 = vadd.f32 %v1937_v38, %v1463_v59  ;;  %v1612_v38 = vld [vmem:[%s2471_s25 + $0x50] sm:$0xff] }
 0x28d   : > { %v1576_v41 = vsel %vm1512_vm10, %v1480_v8, %v1544_v27  ;;  %vm1527_vm11 = vcmp.gt.f32.partialorder %v1495_v40, 0.0  ;;  %v1559_v2 = vmul.f32 0.01, %v1495_v40  ;;  %v1944_v8 = vld [vmem:[%s2086_s27 + $0x50] sm:$0xff] }
 0x28e   : > { %v1640_v42 = vadd.f32 %v1608_v36, %v1576_v41  ;;  %v1363_v43 = vpop.f32.mrf.mxu2 }
 0x28f   : > { %v1449_v48 = vadd.f32 %v2463_v17, %v1363_v43  ;;  %v1591_v28 = vsel %vm1527_vm11, %v1495_v40, %v1559_v2  ;;  %v1945_v40 = vld [vmem:[%s2086_s27 + $0xc8] sm:$0xff] }
 0x290   : > { %1672 = vst.msk [vmem:[%s2481_s28 + $0x30] sm:$0xff] %vm606_vm1, %v1640_v42  ;;  %v1655_v9 = vadd.f32 %v1623_v13, %v1591_v28  ;;  %v1408_v52 = vpop.f32.mrf.mxu3  ;;  %v1627_v43 = vld [vmem:[%s2471_s25 + $0xc8] sm:$0xff] }
 0x291   : > { %v1481_v50 = vadd.f32 %v1938_v49, %v1449_v48  ;;  %v1464_v53 = vadd.f32 %v2463_v17, %v1408_v52 }
 0x292   : > { %1687 = vst.msk [vmem:[%s2481_s28 + $0xa8] sm:$0xff] %vm606_vm1, %v1655_v9 }
 0x293   : > { %vm1513_vm12 = vcmp.gt.f32.partialorder %v1481_v50, 0.0  ;;  %v1545_v39 = vmul.f32 0.01, %v1481_v50  ;;  %v1496_v54 = vadd.f32 %v1939_v3, %v1464_v53  ;;  %v1613_v3 = vld [vmem:[%s2471_s25 + $0x58] sm:$0xff] }
 0x295   : > { %v1577_v55 = vsel %vm1513_vm12, %v1481_v50, %v1545_v39  ;;  %vm1528_vm13 = vcmp.gt.f32.partialorder %v1496_v54, 0.0  ;;  %v1560_v60 = vmul.f32 0.01, %v1496_v54  ;;  %v1946_v50 = vld [vmem:[%s2086_s27 + $0x58] sm:$0xff] }
 0x296   : > { %v1641_v57 = vadd.f32 %v1609_v5, %v1577_v55  ;;  %v1366_v6 = vpop.f32.mrf.mxu2 }
 0x297   : > { %v1450_v10 = vadd.f32 %v2463_v17, %v1366_v6  ;;  %v1592_v34 = vsel %vm1528_vm13, %v1496_v54, %v1560_v60  ;;  %v1947_v54 = vld [vmem:[%s2086_s27 + $0xd0] sm:$0xff] }
 0x298   : > { %1673 = vst.msk [vmem:[%s2481_s28 + $0x38] sm:$0xff] %vm606_vm1, %v1641_v57  ;;  %v1656_v14 = vadd.f32 %v1624_v11, %v1592_v34  ;;  %v1411_v18 = vpop.f32.mrf.mxu3  ;;  %v1628_v6 = vld [vmem:[%s2471_s25 + $0xd0] sm:$0xff] }
 0x299   : > { %v1482_v16 = vadd.f32 %v1940_v12, %v1450_v10  ;;  %v1465_v44 = vadd.f32 %v2463_v17, %v1411_v18 }
 0x29a   : > { %1688 = vst.msk [vmem:[%s2481_s28 + $0xb0] sm:$0xff] %vm606_vm1, %v1656_v14 }
 0x29b   : > { %vm1514_vm14 = vcmp.gt.f32.partialorder %v1482_v16, 0.0  ;;  %v1546_v23 = vmul.f32 0.01, %v1482_v16  ;;  %v1497_v30 = vadd.f32 %v1941_v25, %v1465_v44  ;;  %v1614_v25 = vld [vmem:[%s2471_s25 + $0x60] sm:$0xff] }
 0x29d   : > { %v1578_v29 = vsel %vm1514_vm14, %v1482_v16, %v1546_v23  ;;  %vm1529_vm15 = vcmp.gt.f32.partialorder %v1497_v30, 0.0  ;;  %v1561_v32 = vmul.f32 0.01, %v1497_v30  ;;  %v1948_v16 = vld [vmem:[%s2086_s27 + $0x60] sm:$0xff] }
 0x29e   : > { %v1642_v31 = vadd.f32 %v1610_v24, %v1578_v29  ;;  %v1369_v51 = vpop.f32.mrf.mxu2 }
 0x29f   : > { %v1451_v15 = vadd.f32 %v2463_v17, %v1369_v51  ;;  %v1593_v7 = vsel %vm1529_vm15, %v1497_v30, %v1561_v32  ;;  %v1949_v30 = vld [vmem:[%s2086_s27 + $0xd8] sm:$0xff] }
 0x2a0   : > { %1674 = vst.msk [vmem:[%s2481_s28 + $0x40] sm:$0xff] %vm606_vm1, %v1642_v31  ;;  %v1657_v62 = vadd.f32 %v1625_v46, %v1593_v7  ;;  %v1414_v45 = vpop.f32.mrf.mxu3  ;;  %v1629_v51 = vld [vmem:[%s2471_s25 + $0xd8] sm:$0xff] }
 0x2a1   : > { %v1483_v63 = vadd.f32 %v1942_v56, %v1451_v15  ;;  %v1466_v37 = vadd.f32 %v2463_v17, %v1414_v45 }
 0x2a2   : > { %1689 = vst.msk [vmem:[%s2481_s28 + $0xb8] sm:$0xff] %vm606_vm1, %v1657_v62 }
 0x2a3   : > { %vm1515_vm0 = vcmp.gt.f32.partialorder %v1483_v63, 0.0  ;;  %v1547_v47 = vmul.f32 0.01, %v1483_v63  ;;  %v1498_v20 = vadd.f32 %v1943_v4, %v1466_v37  ;;  %v1615_v4 = vld [vmem:[%s2471_s25 + $0x68] sm:$0xff] }
 0x2a5   : > { %v1579_v26 = vsel %vm1515_vm0, %v1483_v63, %v1547_v47  ;;  %vm1530_vm2 = vcmp.gt.f32.partialorder %v1498_v20, 0.0  ;;  %v1562_v22 = vmul.f32 0.01, %v1498_v20  ;;  %v1950_v63 = vld [vmem:[%s2086_s27 + $0x68] sm:$0xff] }
 0x2a6   : > { %v1643_v21 = vadd.f32 %v1611_v0, %v1579_v26  ;;  %v1372_v1 = vpop.f32.mrf.mxu2 }
 0x2a7   : > { %v1452_v61 = vadd.f32 %v2463_v17, %v1372_v1  ;;  %v1594_v19 = vsel %vm1530_vm2, %v1498_v20, %v1562_v22  ;;  %v1951_v20 = vld [vmem:[%s2086_s27 + $0xe0] sm:$0xff] }
 0x2a8   : > { %1675 = vst.msk [vmem:[%s2481_s28 + $0x48] sm:$0xff] %vm606_vm1, %v1643_v21  ;;  %v1658_v33 = vadd.f32 %v1626_v58, %v1594_v19  ;;  %v1417_v59 = vpop.f32.mrf.mxu3  ;;  %v1630_v1 = vld [vmem:[%s2471_s25 + $0xe0] sm:$0xff] }
 0x2a9   : > { %v1484_v35 = vadd.f32 %v1944_v8, %v1452_v61  ;;  %v1467_v27 = vadd.f32 %v2463_v17, %v1417_v59 }
 0x2aa   : > { %1690 = vst.msk [vmem:[%s2481_s28 + $0xc0] sm:$0xff] %vm606_vm1, %v1658_v33 }
 0x2ab   : > { %vm1516_vm3 = vcmp.gt.f32.partialorder %v1484_v35, 0.0  ;;  %v1548_v36 = vmul.f32 0.01, %v1484_v35  ;;  %v1499_v41 = vadd.f32 %v1945_v40, %v1467_v27  ;;  %v1616_v40 = vld [vmem:[%s2471_s25 + $0x70] sm:$0xff] }
 0x2ad   : > { %v1580_v42 = vsel %vm1516_vm3, %v1484_v35, %v1548_v36  ;;  %vm1531_vm4 = vcmp.gt.f32.partialorder %v1499_v41, 0.0  ;;  %v1563_v13 = vmul.f32 0.01, %v1499_v41  ;;  %v1952_v35 = vld [vmem:[%s2086_s27 + $0x70] sm:$0xff] }
 0x2ae   : > { %v1644_v2 = vadd.f32 %v1612_v38, %v1580_v42  ;;  %v1375_v48 = vpop.f32.mrf.mxu2 }
 0x2af   : > { %v1453_v28 = vadd.f32 %v2463_v17, %v1375_v48  ;;  %v1595_v9 = vsel %vm1531_vm4, %v1499_v41, %v1563_v13  ;;  %v1953_v41 = vld [vmem:[%s2086_s27 + $0xe8] sm:$0xff] }
 0x2b0   : > { %1676 = vst.msk [vmem:[%s2481_s28 + $0x50] sm:$0xff] %vm606_vm1, %v1644_v2  ;;  %v1659_v49 = vadd.f32 %v1627_v43, %v1595_v9  ;;  %v1420_v53 = vpop.f32.mrf.mxu3  ;;  %v1631_v48 = vld [vmem:[%s2471_s25 + $0xe8] sm:$0xff] }
 0x2b1   : > { %v1485_v52 = vadd.f32 %v1946_v50, %v1453_v28  ;;  %v1468_v39 = vadd.f32 %v2463_v17, %v1420_v53 }
 0x2b2   : > { %1691 = vst.msk [vmem:[%s2481_s28 + $0xc8] sm:$0xff] %vm606_vm1, %v1659_v49 }
 0x2b3   : > { %vm1517_vm5 = vcmp.gt.f32.partialorder %v1485_v52, 0.0  ;;  %v1549_v5 = vmul.f32 0.01, %v1485_v52  ;;  %v1500_v55 = vadd.f32 %v1947_v54, %v1468_v39 }
 0x2b5   : > { %v1581_v57 = vsel %vm1517_vm5, %v1485_v52, %v1549_v5  ;;  %vm1532_vm6 = vcmp.gt.f32.partialorder %v1500_v55, 0.0  ;;  %v1564_v11 = vmul.f32 0.01, %v1500_v55  ;;  %v1954_v52 = vld [vmem:[%s2086_s27 + $0xf0] sm:$0xff] }
 0x2b6   : > { %v1645_v60 = vadd.f32 %v1613_v3, %v1581_v57  ;;  %v1378_v10 = vpop.f32.mrf.mxu2  ;;  %v1632_v5 = vld [vmem:[%s2471_s25 + $0xf0] sm:$0xff] }
 0x2b7   : > { %v1454_v34 = vadd.f32 %v2463_v17, %v1378_v10  ;;  %v1596_v14 = vsel %vm1532_vm6, %v1500_v55, %v1564_v11  ;;  %v1633_v10 = vld [vmem:[%s2471_s25 + $0xf8] sm:$0xff] }
 0x2b8   : > { %1677 = vst.msk [vmem:[%s2481_s28 + $0x58] sm:$0xff] %vm606_vm1, %v1645_v60  ;;  %v1660_v12 = vadd.f32 %v1628_v6, %v1596_v14  ;;  %v1423_v44 = vpop.f32.mrf.mxu3  ;;  %v1955_v60 = vld [vmem:[%s2086_s27 + $0xf8] sm:$0xff] }
 0x2b9   : > { %v1486_v18 = vadd.f32 %v1948_v16, %v1454_v34  ;;  %v1469_v23 = vadd.f32 %v2463_v17, %v1423_v44 }
 0x2ba   : > { %1692 = vst.msk [vmem:[%s2481_s28 + $0xd0] sm:$0xff] %vm606_vm1, %v1660_v12 }
 0x2bb   : > { %vm1518_vm7 = vcmp.gt.f32.partialorder %v1486_v18, 0.0  ;;  %v1550_v24 = vmul.f32 0.01, %v1486_v18  ;;  %v1501_v29 = vadd.f32 %v1949_v30, %v1469_v23 }
 0x2bd   : > { %v1582_v31 = vsel %vm1518_vm7, %v1486_v18, %v1550_v24  ;;  %vm1533_vm8 = vcmp.gt.f32.partialorder %v1501_v29, 0.0  ;;  %v1565_v46 = vmul.f32 0.01, %v1501_v29 }
 0x2be   : > { %v1646_v32 = vadd.f32 %v1614_v25, %v1582_v31  ;;  %v1381_v15 = vpop.f32.mrf.mxu2 }
 0x2bf   : > { %v1455_v7 = vadd.f32 %v2463_v17, %v1381_v15  ;;  %v1597_v62 = vsel %vm1533_vm8, %v1501_v29, %v1565_v46 }
 0x2c0   : > { %1678 = vst.msk [vmem:[%s2481_s28 + $0x60] sm:$0xff] %vm606_vm1, %v1646_v32  ;;  %v1661_v56 = vadd.f32 %v1629_v51, %v1597_v62  ;;  %v1426_v37 = vpop.f32.mrf.mxu3 }
 0x2c1   : > { %v1487_v45 = vadd.f32 %v1950_v63, %v1455_v7  ;;  %v1470_v47 = vadd.f32 %v2463_v17, %v1426_v37 }
 0x2c2   : > { %1693 = vst.msk [vmem:[%s2481_s28 + $0xd8] sm:$0xff] %vm606_vm1, %v1661_v56 }
 0x2c3   : > { %vm1519_vm9 = vcmp.gt.f32.partialorder %v1487_v45, 0.0  ;;  %v1551_v0 = vmul.f32 0.01, %v1487_v45  ;;  %v1502_v26 = vadd.f32 %v1951_v20, %v1470_v47 }
 0x2c5   : > { %v1583_v21 = vsel %vm1519_vm9, %v1487_v45, %v1551_v0  ;;  %vm1534_vm10 = vcmp.gt.f32.partialorder %v1502_v26, 0.0  ;;  %v1566_v58 = vmul.f32 0.01, %v1502_v26 }
 0x2c6   : > { %v1647_v22 = vadd.f32 %v1615_v4, %v1583_v21  ;;  %v1384_v61 = vpop.f32.mrf.mxu2 }
 0x2c7   : > { %v1456_v19 = vadd.f32 %v2463_v17, %v1384_v61  ;;  %v1598_v33 = vsel %vm1534_vm10, %v1502_v26, %v1566_v58 }
 0x2c8   : > { %1679 = vst.msk [vmem:[%s2481_s28 + $0x68] sm:$0xff] %vm606_vm1, %v1647_v22  ;;  %v1662_v8 = vadd.f32 %v1630_v1, %v1598_v33  ;;  %v1429_v27 = vpop.f32.mrf.mxu3 }
 0x2c9   : > { %v1488_v59 = vadd.f32 %v1952_v35, %v1456_v19  ;;  %v1471_v36 = vadd.f32 %v2463_v17, %v1429_v27 }
 0x2ca   : > { %1694 = vst.msk [vmem:[%s2481_s28 + $0xe0] sm:$0xff] %vm606_vm1, %v1662_v8 }
 0x2cb   : > { %vm1520_vm11 = vcmp.gt.f32.partialorder %v1488_v59, 0.0  ;;  %v1552_v38 = vmul.f32 0.01, %v1488_v59  ;;  %v1503_v42 = vadd.f32 %v1953_v41, %v1471_v36 }
 0x2cd   : > { %v1584_v2 = vsel %vm1520_vm11, %v1488_v59, %v1552_v38  ;;  %vm1535_vm12 = vcmp.gt.f32.partialorder %v1503_v42, 0.0  ;;  %v1567_v43 = vmul.f32 0.01, %v1503_v42 }
 0x2ce   : > { %v1648_v13 = vadd.f32 %v1616_v40, %v1584_v2 }
 0x2cf   : > { %v1599_v28 = vsel %vm1535_vm12, %v1503_v42, %v1567_v43 }
 0x2d0   : > { %1680 = vst.msk [vmem:[%s2481_s28 + $0x70] sm:$0xff] %vm606_vm1, %v1648_v13  ;;  %v1663_v9 = vadd.f32 %v1631_v48, %v1599_v28  ;;  %v1432_v49 = vpop.f32.mrf.mxu3 }
 0x2d1   : > { %v1472_v50 = vadd.f32 %v2463_v17, %v1432_v49 }
 0x2d2   : > { %1695 = vst.msk [vmem:[%s2481_s28 + $0xe8] sm:$0xff] %vm606_vm1, %v1663_v9 }
 0x2d3   : > { %v1504_v53 = vadd.f32 %v1954_v52, %v1472_v50 }
 0x2d5   : > { %vm1536_vm13 = vcmp.gt.f32.partialorder %v1504_v53, 0.0  ;;  %v1568_v39 = vmul.f32 0.01, %v1504_v53 }
 0x2d7   : > { %v1600_v3 = vsel %vm1536_vm13, %v1504_v53, %v1568_v39 }
 0x2d8   : > { %v1664_v54 = vadd.f32 %v1632_v5, %v1600_v3  ;;  %v1435_v55 = vpop.f32.mrf.mxu3 }
 0x2d9   : > { %v1473_v57 = vadd.f32 %v2463_v17, %v1435_v55 }
 0x2da   : > { %1696 = vst.msk [vmem:[%s2481_s28 + $0xf0] sm:$0xff] %vm606_vm1, %v1664_v54 }
 0x2db   : > { %v1505_v11 = vadd.f32 %v1955_v60, %v1473_v57 }
 0x2dd   : > { %vm1537_vm14 = vcmp.gt.f32.partialorder %v1505_v11, 0.0  ;;  %v1569_v6 = vmul.f32 0.01, %v1505_v11 }
 0x2df   : > { %v1601_v34 = vsel %vm1537_vm14, %v1505_v11, %v1569_v6 }
 0x2e0   : > { %v1665_v14 = vadd.f32 %v1633_v10, %v1601_v34 }
 0x2e2   : > { %1697 = vst.msk [vmem:[%s2481_s28 + $0xf8] sm:$0xff] %vm606_vm1, %v1665_v14 }
 0x2e3 PF: > { %s26_s18 = sadd.s32 1, %s1962_s18  }
 0x2e4   : > { %p23_p5 = scmp.ge.s32.totalorder %s26_s18, 4  }
 0x2e6   :  { %25 = sbr.rel (!%p23_p5) target bundleno = 1 (0x1), region = 127 }

</bundles_post_ra>
